<compile_context>
chip_gen: v7x
topology: tpu7x:2x2x1
jax: 0.10.0
libtpu: 0.0.40
codegen_flags: <defaults>
</compile_context>

<pallas_src>
import jax
import jax.numpy as jnp
from jax.experimental import pallas as pl
from jax.experimental.pallas import tpu as pltpu


def _round_up(x, m):
    return ((x + m - 1) // m) * m


def _generator_kernel(z_ref, w1_ref, b1_ref, w2_ref, b2_ref, w3_ref, b3_ref,
                      out_ref):
    # z: (TB, L)  w1: (L, H1)  w2: (H1, H2)  w3: (H2, S)  biases: (1, dim) f32
    cdt = w1_ref.dtype  # matmul compute dtype (bf16 default, f32 for checking)
    prec = jax.lax.Precision.HIGHEST if cdt == jnp.float32 else None

    # Layer 1: Linear + LeakyReLU(0.2)   (MXU in cdt, f32 accumulate)
    h1 = jnp.dot(z_ref[...].astype(cdt), w1_ref[...],
                 preferred_element_type=jnp.float32, precision=prec)
    h1 = h1 + b1_ref[...]
    h1 = jnp.where(h1 > 0, h1, 0.2 * h1)

    # Layer 2: Linear + LeakyReLU(0.2)
    h2 = jnp.dot(h1.astype(cdt), w2_ref[...],
                 preferred_element_type=jnp.float32, precision=prec)
    h2 = h2 + b2_ref[...]
    h2 = jnp.where(h2 > 0, h2, 0.2 * h2)

    # Layer 3: Linear + Tanh   (tanh on the EUP)
    h3 = jnp.dot(h2.astype(cdt), w3_ref[...],
                 preferred_element_type=jnp.float32, precision=prec)
    h3 = h3 + b3_ref[...]
    out_ref[...] = jnp.tanh(h3).astype(out_ref.dtype)


def prepare_params(params, matmul_dtype=jnp.bfloat16):
    """One-time parameter prep (hoisted out of the per-call path).

    Casts weights to the MXU compute dtype and reshapes biases to (1, dim)
    f32.  Call once and reuse the result across forward calls.
    """
    w1, b1, w2, b2, w3, b3 = params

    def _bias(b):
        return jnp.asarray(b, jnp.float32).reshape(1, -1)

    return (jnp.asarray(w1, matmul_dtype), _bias(b1),
            jnp.asarray(w2, matmul_dtype), _bias(b2),
            jnp.asarray(w3, matmul_dtype), _bias(b3))


def generator_forward(z, prepared_params, *, block_b=1024,
                      vmem_limit_bytes=None):
    """z: (B, latent_dim) float32 -> (B, structure_dim) float32.

    prepared_params: output of prepare_params().
    block_b: batch tile; sweep 1024-2048.  At 1024 the VMEM footprint is
      ~4 MiB; pass vmem_limit_bytes when sweeping beyond ~2048 on v5e
      (16 MiB default scoped VMEM there).
    """
    w1, b1, w2, b2, w3, b3 = prepared_params
    B, L = z.shape
    H1 = w1.shape[1]
    H2 = w2.shape[1]
    S = w3.shape[1]
    assert w1.shape[0] == L and w2.shape[0] == H1 and w3.shape[0] == H2
    # Hidden dims of this module (128, 256) are lane/sublane aligned already.
    assert H1 % 128 == 0 and H2 % 128 == 0

    # Batch padded only to a multiple of 8 (sublane granularity); feature dims
    # are used at their natural sizes (full-array last dims are legal blocks).
    B8 = _round_up(B, 8)

    TB = min(block_b, B8)
    if B8 >= 16:
        # Guarantee >= 2 grid steps so the "parallel" axis spans both v7x TCs.
        TB = min(TB, _round_up(-(-B8 // 2), 8))
    TB = max(8, _round_up(TB, 8))

    grid = (pl.cdiv(B8, TB),)

    z_f32 = z.astype(jnp.float32)
    z_p = z_f32 if B8 == B else jnp.pad(z_f32, ((0, B8 - B), (0, 0)))

    # Activations tile over the batch; weights/biases are resident (block 0,0).
    in_specs = [
        pl.BlockSpec((TB, L), lambda i: (i, 0)),    # z
        pl.BlockSpec((L, H1), lambda i: (0, 0)),    # w1
        pl.BlockSpec((1, H1), lambda i: (0, 0)),    # b1
        pl.BlockSpec((H1, H2), lambda i: (0, 0)),   # w2
        pl.BlockSpec((1, H2), lambda i: (0, 0)),    # b2
        pl.BlockSpec((H2, S), lambda i: (0, 0)),    # w3
        pl.BlockSpec((1, S), lambda i: (0, 0)),     # b3
    ]
    out_specs = pl.BlockSpec((TB, S), lambda i: (i, 0))

    weight_bytes = (w1.size * w1.dtype.itemsize + w2.size * w2.dtype.itemsize
                    + w3.size * w3.dtype.itemsize
                    + (b1.size + b2.size + b3.size) * 4)
    flops = 2 * B8 * (L * H1 + H1 * H2 + H2 * S)
    bytes_accessed = B8 * L * 4 + B8 * S * 4 + weight_bytes
    cost = pl.CostEstimate(flops=flops, transcendentals=B8 * S,
                           bytes_accessed=bytes_accessed)

    cp_kwargs = dict(dimension_semantics=("parallel",))
    if vmem_limit_bytes is not None:
        cp_kwargs["vmem_limit_bytes"] = int(vmem_limit_bytes)

    out_p = pl.pallas_call(
        _generator_kernel,
        out_shape=jax.ShapeDtypeStruct((B8, S), jnp.float32),
        grid=grid,
        in_specs=in_specs,
        out_specs=out_specs,
        compiler_params=pltpu.CompilerParams(**cp_kwargs),
        cost_estimate=cost,
    )(z_p, w1, b1, w2, b2, w3, b3)

    return out_p if B8 == B else out_p[:B]


def init_params(key, latent_dim, structure_dim):
    """Deterministic synthetic init mimicking nn.Linear's U(-1/sqrt(in), 1/sqrt(in))."""
    dims = [(latent_dim, 128), (128, 256), (256, structure_dim)]
    params = []
    for i, (d_in, d_out) in enumerate(dims):
        kw, kb = jax.random.split(jax.random.fold_in(key, i))
        bound = 1.0 / jnp.sqrt(d_in)
        # stored as (in, out) -- transpose of torch's (out, in)
        w = jax.random.uniform(kw, (d_in, d_out), jnp.float32, -bound, bound)
        b = jax.random.uniform(kb, (1, d_out), jnp.float32, -bound, bound)
        params += [w, b]
    return tuple(params)


def reference_forward(z, params):
    w1, b1, w2, b2, w3, b3 = params
    hp = jax.lax.Precision.HIGHEST
    h = jnp.dot(z, w1, precision=hp) + b1
    h = jnp.where(h > 0, h, 0.2 * h)
    h = jnp.dot(h, w2, precision=hp) + b2
    h = jnp.where(h > 0, h, 0.2 * h)
    return jnp.tanh(jnp.dot(h, w3, precision=hp) + b3)


if __name__ == "__main__":
    latent_dim = 32
    structure_dim = 64
    # batch=20: not a multiple of 8 and >= 16, so this exercises the batch
    # padding, the ragged final grid block, and the >= 2-grid-step (v7x) path.
    batch = 20

    key = jax.random.PRNGKey(0)
    kz, kp = jax.random.split(key)
    z = jax.random.normal(kz, (batch, latent_dim), jnp.float32)
    params = init_params(kp, latent_dim, structure_dim)

    ref = reference_forward(z, params)

    # Exact-arithmetic path (f32 MXU, HIGHEST precision): tight tolerance.
    p_f32 = prepare_params(params, matmul_dtype=jnp.float32)
    out_f32 = jax.block_until_ready(generator_forward(z, p_f32))
    assert out_f32.shape == (batch, structure_dim)
    assert jnp.allclose(out_f32, ref, atol=1e-5, rtol=1e-5)

    # Default bf16-MXU / f32-accumulate path: looser tolerance vs f32 reference.
    p_bf16 = prepare_params(params)  # prepared once, reused across calls
    out_bf16 = jax.block_until_ready(generator_forward(z, p_bf16))
    assert out_bf16.shape == (batch, structure_dim)
    assert jnp.allclose(out_bf16, ref, atol=3e-2, rtol=0)

    print("KERNEL_OK")
</pallas_src>

<mosaic_0001>
module attributes {stable_mosaic.version = 11 : i64} {
  func.func @_generator_kernel(%arg0: i32, %arg1: memref<16x32xf32, #tpu.memory_space<vmem>>, %arg2: memref<32x128xf32, #tpu.memory_space<vmem>>, %arg3: memref<1x128xf32, #tpu.memory_space<vmem>>, %arg4: memref<128x256xf32, #tpu.memory_space<vmem>>, %arg5: memref<1x256xf32, #tpu.memory_space<vmem>>, %arg6: memref<256x64xf32, #tpu.memory_space<vmem>>, %arg7: memref<1x64xf32, #tpu.memory_space<vmem>>, %arg8: memref<16x64xf32, #tpu.memory_space<vmem>>) attributes {dimension_semantics = [#tpu.dimension_semantics<parallel>], iteration_bounds = array<i64: 2>, scalar_prefetch = 0 : i64, scratch_operands = 0 : i64, tpu.core_type = #tpu.core_type<tc>, window_params = [{transform_indices = @transform_0, window_bounds = array<i64: 16, 32>}, {pipeline_mode = #tpu.pipeline_mode<synchronous>, transform_indices = @transform_1, window_bounds = array<i64: 32, 128>}, {pipeline_mode = #tpu.pipeline_mode<synchronous>, transform_indices = @transform_2, window_bounds = array<i64: 1, 128>}, {pipeline_mode = #tpu.pipeline_mode<synchronous>, transform_indices = @transform_3, window_bounds = array<i64: 128, 256>}, {pipeline_mode = #tpu.pipeline_mode<synchronous>, transform_indices = @transform_4, window_bounds = array<i64: 1, 256>}, {pipeline_mode = #tpu.pipeline_mode<synchronous>, transform_indices = @transform_5, window_bounds = array<i64: 256, 64>}, {pipeline_mode = #tpu.pipeline_mode<synchronous>, transform_indices = @transform_6, window_bounds = array<i64: 1, 64>}, {transform_indices = @transform_7, window_bounds = array<i64: 16, 64>}]} {
    %c0 = arith.constant 0 : index
    %c0_0 = arith.constant 0 : index
    %0 = vector.load %arg1[%c0, %c0_0] : memref<16x32xf32, #tpu.memory_space<vmem>>, vector<16x32xf32>
    %c0_1 = arith.constant 0 : index
    %c0_2 = arith.constant 0 : index
    %1 = vector.load %arg2[%c0_1, %c0_2] : memref<32x128xf32, #tpu.memory_space<vmem>>, vector<32x128xf32>
    %cst = arith.constant dense<0.000000e+00> : vector<16x128xf32>
    %2 = tpu.matmul %0, %1, %cst {dimension_numbers = #tpu.dot_dimension_numbers<[1], [0], [0], [1], [0, 0, 1, 1], [], []>, precision = #tpu.contract_precision<fp32>} : vector<16x32xf32>, vector<32x128xf32>, vector<16x128xf32> -> vector<16x128xf32>
    %c0_3 = arith.constant 0 : index
    %c0_4 = arith.constant 0 : index
    %3 = vector.load %arg3[%c0_3, %c0_4] : memref<1x128xf32, #tpu.memory_space<vmem>>, vector<1x128xf32>
    %4 = vector.broadcast %3 : vector<1x128xf32> to vector<16x128xf32>
    %5 = arith.addf %2, %4 : vector<16x128xf32>
    %cst_5 = arith.constant 0.000000e+00 : f32
    %6 = vector.broadcast %cst_5 : f32 to vector<16x128xf32>
    %7 = arith.cmpf ogt, %5, %6 : vector<16x128xf32>
    %cst_6 = arith.constant 2.000000e-01 : f32
    %8 = vector.broadcast %cst_6 : f32 to vector<16x128xf32>
    %9 = arith.mulf %8, %5 : vector<16x128xf32>
    %10 = arith.select %7, %5, %9 : vector<16x128xi1>, vector<16x128xf32>
    %c0_7 = arith.constant 0 : index
    %c0_8 = arith.constant 0 : index
    %11 = vector.load %arg4[%c0_7, %c0_8] : memref<128x256xf32, #tpu.memory_space<vmem>>, vector<128x256xf32>
    %cst_9 = arith.constant dense<0.000000e+00> : vector<16x256xf32>
    %12 = tpu.matmul %10, %11, %cst_9 {dimension_numbers = #tpu.dot_dimension_numbers<[1], [0], [0], [1], [0, 0, 1, 1], [], []>, precision = #tpu.contract_precision<fp32>} : vector<16x128xf32>, vector<128x256xf32>, vector<16x256xf32> -> vector<16x256xf32>
    %c0_10 = arith.constant 0 : index
    %c0_11 = arith.constant 0 : index
    %13 = vector.load %arg5[%c0_10, %c0_11] : memref<1x256xf32, #tpu.memory_space<vmem>>, vector<1x256xf32>
    %14 = vector.broadcast %13 : vector<1x256xf32> to vector<16x256xf32>
    %15 = arith.addf %12, %14 : vector<16x256xf32>
    %cst_12 = arith.constant 0.000000e+00 : f32
    %16 = vector.broadcast %cst_12 : f32 to vector<16x256xf32>
    %17 = arith.cmpf ogt, %15, %16 : vector<16x256xf32>
    %cst_13 = arith.constant 2.000000e-01 : f32
    %18 = vector.broadcast %cst_13 : f32 to vector<16x256xf32>
    %19 = arith.mulf %18, %15 : vector<16x256xf32>
    %20 = arith.select %17, %15, %19 : vector<16x256xi1>, vector<16x256xf32>
    %c0_14 = arith.constant 0 : index
    %c0_15 = arith.constant 0 : index
    %21 = vector.load %arg6[%c0_14, %c0_15] : memref<256x64xf32, #tpu.memory_space<vmem>>, vector<256x64xf32>
    %cst_16 = arith.constant dense<0.000000e+00> : vector<16x64xf32>
    %22 = tpu.matmul %20, %21, %cst_16 {dimension_numbers = #tpu.dot_dimension_numbers<[1], [0], [0], [1], [0, 0, 1, 1], [], []>, precision = #tpu.contract_precision<fp32>} : vector<16x256xf32>, vector<256x64xf32>, vector<16x64xf32> -> vector<16x64xf32>
    %c0_17 = arith.constant 0 : index
    %c0_18 = arith.constant 0 : index
    %23 = vector.load %arg7[%c0_17, %c0_18] : memref<1x64xf32, #tpu.memory_space<vmem>>, vector<1x64xf32>
    %24 = vector.broadcast %23 : vector<1x64xf32> to vector<16x64xf32>
    %25 = arith.addf %22, %24 : vector<16x64xf32>
    %26 = math.tanh %25 : vector<16x64xf32>
    %c0_19 = arith.constant 0 : index
    %c0_20 = arith.constant 0 : index
    %27 = vector.load %arg8[%c0_19, %c0_20] : memref<16x64xf32, #tpu.memory_space<vmem>>, vector<16x64xf32>
    tpu.vector_store %arg8[%c0_19, %c0_20], %26 {strides = array<i32>} : memref<16x64xf32, #tpu.memory_space<vmem>>, vector<16x64xf32>,
    return
  }
  func.func @transform_0(%arg0: i32) -> (i32, i32) {
    %c0_i32 = arith.constant 0 : i32
    %c0_i32_0 = arith.constant 0 : i32
    return %arg0, %c0_i32 : i32, i32
  }
  func.func @transform_1(%arg0: i32) -> (i32, i32) {
    %c0_i32 = arith.constant 0 : i32
    %c0_i32_0 = arith.constant 0 : i32
    %c0_i32_1 = arith.constant 0 : i32
    return %c0_i32, %c0_i32_0 : i32, i32
  }
  func.func @transform_2(%arg0: i32) -> (i32, i32) {
    %c0_i32 = arith.constant 0 : i32
    %c0_i32_0 = arith.constant 0 : i32
    %c0_i32_1 = arith.constant 0 : i32
    return %c0_i32, %c0_i32_0 : i32, i32
  }
  func.func @transform_3(%arg0: i32) -> (i32, i32) {
    %c0_i32 = arith.constant 0 : i32
    %c0_i32_0 = arith.constant 0 : i32
    %c0_i32_1 = arith.constant 0 : i32
    return %c0_i32, %c0_i32_0 : i32, i32
  }
  func.func @transform_4(%arg0: i32) -> (i32, i32) {
    %c0_i32 = arith.constant 0 : i32
    %c0_i32_0 = arith.constant 0 : i32
    %c0_i32_1 = arith.constant 0 : i32
    return %c0_i32, %c0_i32_0 : i32, i32
  }
  func.func @transform_5(%arg0: i32) -> (i32, i32) {
    %c0_i32 = arith.constant 0 : i32
    %c0_i32_0 = arith.constant 0 : i32
    %c0_i32_1 = arith.constant 0 : i32
    return %c0_i32, %c0_i32_0 : i32, i32
  }
  func.func @transform_6(%arg0: i32) -> (i32, i32) {
    %c0_i32 = arith.constant 0 : i32
    %c0_i32_0 = arith.constant 0 : i32
    %c0_i32_1 = arith.constant 0 : i32
    return %c0_i32, %c0_i32_0 : i32, i32
  }
  func.func @transform_7(%arg0: i32) -> (i32, i32) {
    %c0_i32 = arith.constant 0 : i32
    %c0_i32_0 = arith.constant 0 : i32
    return %arg0, %c0_i32 : i32, i32
  }
}

</mosaic_0001>

<bundles_post_ra>
// kernel: tpu_custom_call.1
= control target key start
LH: loop header
LB: loop body
LE: loop exit
PB: predicated region body
PF: predicated region fallthrough
CT: control target
= control target key end

     0   :  { %12 = vsyncpa [#allocation3], 0  ;;  %s5246_s0 = inlined_call_operand.vmem [shape: f32[24,32], index: 0, kind: input, shape index: {}]   ;;  %s5247_s1 = inlined_call_operand.vmem [shape: f32[32,128], index: 1, kind: input, shape index: {}]   ;;  %s5248_s2 = inlined_call_operand.vmem [shape: f32[1,128], index: 2, kind: input, shape index: {}]   ;;  %s5249_s3 = inlined_call_operand.vmem [shape: f32[128,256], index: 3, kind: input, shape index: {}]   ;;  %s5250_s4 = inlined_call_operand.vmem [shape: f32[1,256], index: 4, kind: input, shape index: {}]   ;;  %s5251_s5 = inlined_call_operand.vmem [shape: f32[256,64], index: 5, kind: input, shape index: {}]   ;;  %s5252_s6 = inlined_call_operand.vmem [shape: f32[1,64], index: 6, kind: input, shape index: {}]   ;;  %s5253_s7 = inlined_call_operand.hbm [shape: f32[24,64], index: 7, kind: output, shape index: {}]  }
   0x1   :  { %14 = vsyncpa [#allocation3 + $0x1], 0  ;;  %s3832_s24 = smov 0   ;;  %s3834_s25 = smov 0  }
   0x2   :  { %s3836_s26 = smov 0   ;;  %s3838_s27 = smov 0  }
   0x3 LB: > { %s3853_s28 = sadd.s32 4294967295, %s3786_s27   ;;  %s2862_s29 = sadd.s32 4294967294, %s3786_s27   ;;  %s3786_s27 = sphi %s3838_s27, %s5634_s27   ;;  %s3782_s26 = sphi %s3836_s26, %s5633_s26   ;;  %s3778_s25 = sphi %s3834_s25, %s5632_s25   ;;  %s3774_s24 = sphi %s3832_s24, %s5631_s24  }
   0x4   : > { %s3857_s30 = sadd.s32 1, %s3786_s27   ;;  %s179_s8 = sadd.s32 1, %s3782_s26 }
   0x5   : > { %s176_s9 = ssub.s32 %s3786_s27, %s3857_s30  ;;  %p189_p0 = scmp.ne.s32.totalorder %s3782_s26, %s3778_s25 }
   0x6   : > { %p177_p1 = scmp.eq.s32.totalorder %s176_s9, 0  ;;  %p190_p2 = scmp.eq.s32.totalorder %s3853_s28, 1 }
   0x7   : > { %p195_p3 = scmp.ne.s32.totalorder %s3778_s25, %s3774_s24  ;;  %p196_p4 = scmp.eq.s32.totalorder %s2862_s29, 1 }
   0x8   : > { %s3868_s10 = scalar_select %p177_p1, %s3782_s26, %s179_s8  }
   0x9   : > { %p3870_p5 = por %p190_p2, %p189_p0  ;;  %p3874_p6 = por %p196_p4, %p195_p3 }
   0xa   : > { %p2865_p7 = scmp.ge.s32.totalorder %s3786_s27, 1  ;;  %p249_p8 = scmp.lt.s32.totalorder %s3786_s27, 3 }
   0xc   : > { %p250_p9 = pnand %p2865_p7, %p249_p8 }
   0xe   : > { %253 = sbr.rel (%p250_p9) target bundleno = 1089 (0x441), region = 48 }
  0x15   : > { %v306_v0 = vld [vmem:[%s5247_s1] sm:$0xff]  ;;  %v307_v1 = vld [vmem:[%s5247_s1 + $0x8] sm:$0xff]  ;;  %v308_v2 = vld [vmem:[%s5247_s1 + $0x10] sm:$0xff]  ;;  %s3890_s19 = sshll.u32 %s3853_s28, 1  ;;  %vm317_vm0 = vcmask 261120   ;;  %s282_s15 = sand.u32 1, %s3778_s25  }
  0x16   : > { %v325_v3 = vand.u32 4294901760, %v306_v0  ;;  %v328_v4 = vand.u32 4294901760, %v307_v1  ;;  %v309_v5 = vld [vmem:[%s5247_s1 + $0x18] sm:$0xff]  ;;  %v331_v6 = vand.u32 4294901760, %v308_v2  ;;  %p290_p10 = scmp.lt.s32.totalorder %s3890_s19, 2  ;;  %v859_v7 = vld [vmem:[%s5249_s3 + $0x8] sm:$0xff] }
  0x17   : > { %v334_v8 = vand.u32 4294901760, %v309_v5  ;;  %v861_v9 = vld [vmem:[%s5249_s3 + $0x18] sm:$0xff]  ;;  %v902_v10 = vand.u32 4294901760, %v859_v7  ;;  %v858_v25 = vld [vmem:[%s5249_s3] sm:$0xff]  ;;  %v860_v31 = vld [vmem:[%s5249_s3 + $0x10] sm:$0xff]  ;;  %s2866_s18 = sshll.u32 %s282_s15, 4 }
  0x18   : > { %v3902_v11 = vpack.c.bf16 %v328_v4, %v325_v3  ;;  %s291_s9 = scalar_select %p290_p10, %s3890_s19, 2  ;;  %v3905_v12 = vsub.f32 %v306_v0, %v325_v3  ;;  %v3907_v13 = vsub.f32 %v307_v1, %v328_v4  ;;  %v3909_v14 = vsub.f32 %v308_v2, %v331_v6  ;;  %v863_v35 = vld [vmem:[%s5249_s3 + $0x28] sm:$0xff]  ;;  %v865_v44 = vld [vmem:[%s5249_s3 + $0x38] sm:$0xff]  ;;  %v862_v45 = vld [vmem:[%s5249_s3 + $0x20] sm:$0xff] }
  0x19   : > { %v3911_v15 = vpack.c.bf16 %v334_v8, %v331_v6  ;;  %v3913_v16 = vsub.f32 %v309_v5, %v334_v8  ;;  %v906_v17 = vand.u32 4294901760, %v861_v9  ;;  %v3915_v18 = vsub.f32 %v859_v7, %v902_v10  ;;  %v864_v50 = vld [vmem:[%s5249_s3 + $0x30] sm:$0xff]  ;;  %v867_v51 = vld [vmem:[%s5249_s3 + $0x48] sm:$0xff]  ;;  %v869_v52 = vld [vmem:[%s5249_s3 + $0x58] sm:$0xff]  ;;  %s284_s20 = scalar_lea.vmem [#allocation2], %s2866_s18  ;;  %s5186_s21 = scalar_lea.sflag [#allocation3], %s282_s15 }
  0x1a   : > { %3212 = vmatprep.subr.bf16.mxu0 %v3902_v11  ;;  %s2868_s13 = sshll.u32 %s291_s9, 3  ;;  %v416_v19 = vand.u32 4294901760, %v3905_v12  ;;  %v423_v20 = vand.u32 4294901760, %v3907_v13  ;;  %v430_v21 = vand.u32 4294901760, %v3909_v14  ;;  %v904_v42 = vand.u32 4294901760, %v858_v25  ;;  %v866_v1 = vld [vmem:[%s5249_s3 + $0x40] sm:$0xff] }
  0x1b   : > { %3214 = vmatpush3.bf16.msra.mxu0 %v3902_v11  ;;  %s293_s16 = scalar_lea.vmem %s5246_s0, %s2868_s13  ;;  %v437_v22 = vand.u32 4294901760, %v3913_v16  ;;  %v3926_v23 = vpack.c.bf16 %v906_v17, %v902_v10  ;;  %v3928_v24 = vsub.f32 %v861_v9, %v906_v17  ;;  %v908_v43 = vand.u32 4294901760, %v860_v31  ;;  %v868_v6 = vld [vmem:[%s5249_s3 + $0x50] sm:$0xff]  ;;  %v871_v7 = vld [vmem:[%s5249_s3 + $0x68] sm:$0xff]  ;;  %v873_v8 = vld [vmem:[%s5249_s3 + $0x78] sm:$0xff]  ;;  %s2789_s22 = ssub.s32 (%p3870_p5), 3, %s3890_s19 }
  0x1c   : > { %3216 = vmatprep.subr.bf16.mxu0 %v3911_v15  ;;  %v304_v26 = vld [vmem:[%s293_s16] sm:$0xff]  ;;  %v305_v27 = vld [vmem:[%s293_s16 + $0x8] sm:$0xff]  ;;  %v417_v28 = vsub.f32 %v3905_v12, %v416_v19  ;;  %v424_v29 = vsub.f32 %v3907_v13, %v423_v20  ;;  %v431_v30 = vsub.f32 %v3909_v14, %v430_v21  ;;  %v910_v49 = vand.u32 4294901760, %v863_v35  ;;  %p2790_p11 = scmp.lt.s32.totalorder (%p3870_p5), %s2789_s22, 2 }
  0x1d   : > { %v319_v32 = vsel %vm317_vm0, %v304_v26, 0  ;;  %v322_v33 = vsel %vm317_vm0, %v305_v27, 0  ;;  %v438_v34 = vsub.f32 %v3913_v16, %v437_v22  ;;  %3260 = vmatprep.subr.bf16.mxu1 %v3926_v23  ;;  %v3981_v54 = vpack.c.bf16 %v908_v43, %v904_v42  ;;  %v870_v26 = vld [vmem:[%s5249_s3 + $0x60] sm:$0xff]  ;;  %v872_v27 = vld [vmem:[%s5249_s3 + $0x70] sm:$0xff] }
  0x1e   : > { %v3955_v36 = vand.u32 4294901760, %v319_v32  ;;  %v3957_v37 = vand.u32 4294901760, %v322_v33  ;;  %v418_v38 = vand.u32 4294901760, %v417_v28  ;;  %v425_v39 = vand.u32 4294901760, %v424_v29 }
  0x1f   : > { %3218 = vmatpush3.bf16.msra.mxu0 %v3911_v15  ;;  %v432_v40 = vand.u32 4294901760, %v431_v30  ;;  %v439_v41 = vand.u32 4294901760, %v438_v34  ;;  %v3983_v55 = vsub.f32 %v858_v25, %v904_v42  ;;  %v3985_v56 = vsub.f32 %v860_v31, %v908_v43  ;;  %3262 = vmatpush1.bf16.msra.mxu1 %v3981_v54 }
  0x20   : > { %v3967_v46 = vsub.f32 %v319_v32, %v3955_v36  ;;  %v3219_v47 = vpack.c.bf16 %v425_v39, %v418_v38  ;;  %v3970_v48 = vsub.f32 %v322_v33, %v3957_v37  ;;  %v914_v59 = vand.u32 4294901760, %v865_v44 }
  0x21   : > { %v3223_v53 = vpack.c.bf16 %v439_v41, %v432_v40  ;;  %v3989_v60 = vsub.f32 %v863_v35, %v910_v49  ;;  %v912_v61 = vand.u32 4294901760, %v862_v45  ;;  %v916_v62 = vand.u32 4294901760, %v864_v50 }
  0x22   : > { %v395_v57 = vand.u32 4294901760, %v3967_v46  ;;  %3220 = vmatprep.subr.bf16.mxu0 %v3219_v47  ;;  %v405_v58 = vand.u32 4294901760, %v3970_v48  ;;  %v918_v63 = vand.u32 4294901760, %v867_v51  ;;  %v922_v0 = vand.u32 4294901760, %v869_v52 }
  0x23   : > { %v4001_v4 = vpack.c.bf16 %v914_v59, %v910_v49  ;;  %v4003_v5 = vsub.f32 %v865_v44, %v914_v59  ;;  %v4014_v9 = vpack.c.bf16 %v916_v62, %v912_v61  ;;  %v4016_v10 = vsub.f32 %v862_v45, %v912_v61 }
  0x24   : > { %v396_v2 = vsub.f32 %v3967_v46, %v395_v57  ;;  %v406_v3 = vsub.f32 %v3970_v48, %v405_v58  ;;  %v4018_v17 = vsub.f32 %v864_v50, %v916_v62  ;;  %v4020_v25 = vpack.c.bf16 %v922_v0, %v918_v63 }
  0x25   : > { %5409 = vst [vmem:[#allocation5_spill] sm:$0xff] %v4001_v4  ;;  %5410 = vst [vmem:[#allocation6_spill] sm:$0xff] %v4014_v9  ;;  %3264 = vmatprep.subr.bf16.mxu1 %v4001_v4  ;;  %v4029_v30 = vsub.f32 %v867_v51, %v918_v63  ;;  %v4031_v31 = vsub.f32 %v869_v52, %v922_v0  ;;  %v920_v32 = vand.u32 4294901760, %v866_v1  ;;  %v924_v33 = vand.u32 4294901760, %v868_v6 }
  0x26   : > { %5411 = vst [vmem:[#allocation7_spill] sm:$0xff] %v4016_v10  ;;  %5412 = vst [vmem:[#allocation8_spill] sm:$0xff] %v4018_v17  ;;  %v397_v28 = vand.u32 4294901760, %v396_v2  ;;  %v407_v29 = vand.u32 4294901760, %v406_v3  ;;  %3266 = vmatpush1.bf16.msra.mxu1 %v4014_v9  ;;  %v926_v34 = vand.u32 4294901760, %v871_v7  ;;  %v930_v35 = vand.u32 4294901760, %v873_v8 }
  0x27   : > { %5413 = vst [vmem:[#allocation9_spill] sm:$0xff] %v4020_v25  ;;  %3268 = vmatprep.subr.bf16.mxu1 %v4020_v25  ;;  %v928_v38 = vand.u32 4294901760, %v870_v26  ;;  %v932_v39 = vand.u32 4294901760, %v872_v27  ;;  %v4035_v40 = vpack.c.bf16 %v924_v33, %v920_v32  ;;  %v4037_v41 = vsub.f32 %v866_v1, %v920_v32  ;;  %v883_v1 = vld [vmem:[%s5249_s3 + $0xc8] sm:$0xff]  ;;  %v885_v2 = vld [vmem:[%s5249_s3 + $0xd8] sm:$0xff] }
  0x28   : > { %3153 = vmatprep.mubr.f32.mxu0 %v397_v28  ;;  %v4039_v42 = vsub.f32 %v868_v6, %v924_v33  ;;  %v4041_v43 = vpack.c.bf16 %v930_v35, %v926_v34  ;;  %v3227_v44 = vpack.c.bf16 %v3907_v13, %v3905_v12  ;;  %v4046_v45 = vsub.f32 %v871_v7, %v926_v34  ;;  %v875_v12 = vld [vmem:[%s5249_s3 + $0x88] sm:$0xff]  ;;  %v877_v13 = vld [vmem:[%s5249_s3 + $0x98] sm:$0xff]  ;;  %v882_v7 = vld [vmem:[%s5249_s3 + $0xc0] sm:$0xff] }
  0x29   : > { %3154 = vmatmul.mubr.f32.vlgmr.msra.gmra.mrb[0].mxu0 %v407_v29  ;;  %5414 = vst [vmem:[#allocation10_spill] sm:$0xff] %v4035_v40  ;;  %v4048_v49 = vsub.f32 %v873_v8, %v930_v35  ;;  %v4051_v50 = vpack.c.bf16 %v932_v39, %v928_v38  ;;  %v4053_v51 = vsub.f32 %v870_v26, %v928_v38  ;;  %v950_v3 = vand.u32 4294901760, %v883_v1  ;;  %v884_v8 = vld [vmem:[%s5249_s3 + $0xd0] sm:$0xff]  ;;  %v887_v32 = vld [vmem:[%s5249_s3 + $0xe8] sm:$0xff]  ;;  %v889_v33 = vld [vmem:[%s5249_s3 + $0xf8] sm:$0xff] }
  0x2a   : > { %5415 = vst [vmem:[#allocation11_spill] sm:$0xff] %v4041_v43  ;;  %3222 = vmatpush3.bf16.msra.mxu0 %v3219_v47  ;;  %3164 = vmatprep.mubr.f32.mxu0 %v3955_v36  ;;  %v4055_v52 = vsub.f32 %v872_v27, %v932_v39  ;;  %v3231_v47 = vpack.c.bf16 %v3913_v16, %v3909_v14  ;;  %v934_v14 = vand.u32 4294901760, %v875_v12  ;;  %v938_v16 = vand.u32 4294901760, %v877_v13 }
  0x2b   : > { %3224 = vmatprep.subr.bf16.mxu0 %v3223_v53  ;;  %3270 = vmatpush1.bf16.msra.mxu1 %v4035_v40  ;;  %5416 = vst [vmem:[#allocation12_spill] sm:$0xff] %v4051_v50  ;;  %v3247_v59 = vpack.c.bf16 %v437_v22, %v430_v21  ;;  %v954_v6 = vand.u32 4294901760, %v885_v2  ;;  %v952_v26 = vand.u32 4294901760, %v882_v7  ;;  %v956_v27 = vand.u32 4294901760, %v884_v8 }
  0x2c   : > { %3272 = vmatprep.subr.bf16.mxu1 %v4041_v43  ;;  %v4100_v21 = vpack.c.bf16 %v938_v16, %v934_v14  ;;  %v4146_v34 = vsub.f32 %v875_v12, %v934_v14  ;;  %v4148_v35 = vsub.f32 %v877_v13, %v938_v16  ;;  %v958_v38 = vand.u32 4294901760, %v887_v32  ;;  %v886_v12 = vld [vmem:[%s5249_s3 + $0xe0] sm:$0xff]  ;;  %v888_v13 = vld [vmem:[%s5249_s3 + $0xf0] sm:$0xff] }
  0x2d   : > { %v4136_v28 = vpack.c.bf16 %v954_v6, %v950_v3  ;;  %v4138_v29 = vpack.c.bf16 %v956_v27, %v952_v26  ;;  %v962_v39 = vand.u32 4294901760, %v889_v33  ;;  %vm2777_vm7 = vcmask 523264  }
  0x2e   : > { %3226 = vmatpush3.bf16.msra.mxu0 %v3223_v53  ;;  %v3243_v53 = vpack.c.bf16 %v423_v20, %v416_v19  ;;  %5417 = vst [vmem:[#allocation13_spill] sm:$0xff] %v4100_v21 }
  0x2f   : > { %3228 = vmatprep.subr.bf16.mxu0 %v3227_v44  ;;  %3274 = vmatpush1.bf16.msra.mxu1 %v4051_v50  ;;  %5421 = vst [vmem:[#allocation17_spill] sm:$0xff] %v4136_v28  ;;  %5422 = vst [vmem:[#allocation18_spill] sm:$0xff] %v4138_v29 }
  0x30   : > { %3276 = vmatprep.subr.bf16.mxu1 %v4100_v21 }
  0x31   : > { %3165 = vmatmul.mubr.f32.vlgmr.msra.gmra.mrb[0].mxu0 %v3957_v37 }
  0x32   : > { %3230 = vmatpush3.bf16.msra.mxu0 %v3227_v44  ;;  %3175 = vmatprep.mubr.f32.mxu0 %v3967_v46 }
  0x33   : > { %3232 = vmatprep.subr.bf16.mxu0 %v3231_v47 }
  0x36   : > { %3234 = vmatpush3.bf16.msra.mxu0 %v3231_v47 }
  0x37   : > { %3236 = vmatprep.subr.bf16.mxu0 %v3902_v11 }
  0x39   : > { %3176 = vmatmul.mubr.f32.vlgmr.msra.gmra.mrb[0].mxu0 %v3970_v48 }
  0x3a   : > { %3238 = vmatpush3.bf16.msra.mxu0 %v3902_v11  ;;  %3186 = vmatprep.mubr.f32.mxu0 %v395_v57  ;;  %v878_v57 = vld [vmem:[%s5249_s3 + $0xa0] sm:$0xff] }
  0x3b   : > { %3240 = vmatprep.subr.bf16.mxu0 %v3911_v15  ;;  %v944_v61 = vand.u32 4294901760, %v878_v57 }
  0x3d   : > { %v4166_v14 = vsub.f32 %v878_v57, %v944_v61  ;;  %v5261_v57 = vmov 0.0  }
  0x3e   : > { %3242 = vmatpush3.bf16.msra.mxu0 %v3911_v15  ;;  %998 = vmatprep.mubr.f32.mxu1 %v5261_v57 }
  0x3f   : > { %3244 = vmatprep.subr.bf16.mxu0 %v3243_v53 }
  0x41   : > { %3187 = vmatmul.mubr.f32.vlgmr.msra.gmra.mrb[0].mxu0 %v405_v58  ;;  %v880_v58 = vld [vmem:[%s5249_s3 + $0xb0] sm:$0xff] }
  0x42   : > { %3246 = vmatpush3.bf16.msra.mxu0 %v3243_v53  ;;  %3197 = vmatprep.mubr.f32.mxu0 %v3955_v36  ;;  %v948_v62 = vand.u32 4294901760, %v880_v58 }
  0x43   : > { %3248 = vmatprep.subr.bf16.mxu0 %v3247_v59 }
  0x44   : > { %v4120_v0 = vpack.c.bf16 %v948_v62, %v944_v61  ;;  %v4168_v16 = vsub.f32 %v880_v58, %v948_v62  ;;  %v5259_v58 = vand.u32 4294901760, %v3915_v18  ;;  %v5257_v61 = vand.u32 4294901760, %v3928_v24 }
  0x45   : > { %v5256_v62 = vand.u32 4294901760, %v3983_v55 }
  0x46   : > { %3250 = vmatpush3.bf16.msra.mxu0 %v3247_v59  ;;  %5420 = vst [vmem:[#allocation16_spill] sm:$0xff] %v4120_v0 }
  0x47   : > { %3252 = vmatprep.subr.bf16.mxu0 %v3902_v11 }
  0x49   : > { %3198 = vmatmul.mubr.f32.vlgmr.msra.gmra.mrb[0].mxu0 %v3957_v37 }
  0x4a   : > { %3254 = vmatpush3.bf16.msra.mxu0 %v3902_v11  ;;  %3208 = vmatprep.mubr.f32.mxu0 %v3955_v36  ;;  %v874_v11 = vld [vmem:[%s5249_s3 + $0x80] sm:$0xff]  ;;  %v879_v36 = vld [vmem:[%s5249_s3 + $0xa8] sm:$0xff] }
  0x4b   : > { %3256 = vmatprep.subr.bf16.mxu0 %v3911_v15  ;;  %v936_v19 = vand.u32 4294901760, %v874_v11  ;;  %v942_v46 = vand.u32 4294901760, %v879_v36 }
  0x4d   : > { %v4151_v44 = vsub.f32 %v874_v11, %v936_v19  ;;  %v4155_v53 = vsub.f32 %v879_v36, %v942_v46  ;;  %v4170_v11 = vsub.f32 %v883_v1, %v950_v3  ;;  %v4178_v36 = vpack.c.bf16 %v962_v39, %v958_v38 }
  0x4e   : > { %3258 = vmatpush3.bf16.msra.mxu0 %v3911_v15  ;;  %v876_v15 = vld [vmem:[%s5249_s3 + $0x90] sm:$0xff]  ;;  %v5258_v1 = vand.u32 4294901760, %v3985_v56 }
  0x4f   : > { %v940_v20 = vand.u32 4294901760, %v876_v15  ;;  %5423 = vst [vmem:[#allocation19_spill] sm:$0xff] %v4178_v36 }
  0x51   : > { %3209 = vmatmul.mubr.f32.vlgmr.msra.gmra.mrb[0].mxu0 %v3957_v37  ;;  %v4102_v22 = vpack.c.bf16 %v940_v20, %v936_v19  ;;  %v881_v37 = vld [vmem:[%s5249_s3 + $0xb8] sm:$0xff]  ;;  %v4153_v47 = vsub.f32 %v876_v15, %v940_v20  ;;  %v4172_v15 = vsub.f32 %v885_v2, %v954_v6  ;;  %v4174_v19 = vsub.f32 %v882_v7, %v952_v26 }
  0x52   : > { %v946_v48 = vand.u32 4294901760, %v881_v37  ;;  %v4176_v20 = vsub.f32 %v884_v8, %v956_v27  ;;  %v5260_v7 = vand.u32 4294901760, %v3989_v60  ;;  %v1024_v8 = vsub.f32 %v3915_v18, %v5259_v58 }
  0x53   : > { %5418 = vst [vmem:[#allocation14_spill] sm:$0xff] %v4102_v22  ;;  %3278 = vmatpush1.bf16.msra.mxu1 %v4102_v22  ;;  %v1036_v26 = vsub.f32 %v3928_v24, %v5257_v61  ;;  %v1030_v27 = vsub.f32 %v3983_v55, %v5256_v62  ;;  %v5302_v21 = vand.u32 4294901760, %v4174_v19 }
  0x54   : > { %v4118_v63 = vpack.c.bf16 %v946_v48, %v942_v46  ;;  %v4157_v59 = vsub.f32 %v881_v37, %v946_v48  ;;  %v4180_v37 = vsub.f32 %v887_v32, %v958_v38  ;;  %v4182_v46 = vsub.f32 %v889_v33, %v962_v39 }
  0x55   : > { %v960_v48 = vand.u32 4294901760, %v886_v12  ;;  %v1042_v32 = vsub.f32 %v3985_v56, %v5258_v1  ;;  %v5265_v33 = vand.u32 4294901760, %v4003_v5  ;;  %v5266_v38 = vand.u32 4294901760, %v4016_v10 }
  0x56   : > { %5419 = vst [vmem:[#allocation15_spill] sm:$0xff] %v4118_v63  ;;  %3280 = vmatprep.subr.bf16.mxu1 %v4118_v63  ;;  %v5269_v39 = vand.u32 4294901760, %v4018_v17 }
  0x57   : > { %3282 = vmatpush1.bf16.msra.mxu1 %v4120_v0  ;;  %v4192_v3 = vsub.f32 %v886_v12, %v960_v48  ;;  %v1025_v12 = vand.u32 4294901760, %v1024_v8  ;;  %v1043_v62 = vand.u32 4294901760, %v1042_v32  ;;  %v1060_v1 = vsub.f32 %v4003_v5, %v5265_v33 }
  0x58   : > { %3284 = vmatprep.subr.bf16.mxu1 %v4136_v28  ;;  %v1054_v58 = vsub.f32 %v4016_v10, %v5266_v38  ;;  %v5267_v8 = vand.u32 4294901760, %v4029_v30  ;;  %v5270_v33 = vand.u32 4294901760, %v4037_v41 }
  0x59   : > { %v5313_v43 = vand.u32 4294901760, %v4192_v3 }
  0x5a   : > { %v1055_v32 = vand.u32 4294901760, %v1054_v58  ;;  %v1072_v38 = vsub.f32 %v4029_v30, %v5267_v8  ;;  %v5275_v58 = vand.u32 4294901760, %v4048_v49 }
  0x5b   : > { %3286 = vmatpush1.bf16.msra.mxu1 %v4138_v29  ;;  %v964_v29 = vand.u32 4294901760, %v888_v13 }
  0x5c   : > { %3288 = vmatprep.subr.bf16.mxu1 %v4178_v36  ;;  %v5282_v36 = vand.u32 4294901760, %v4146_v34 }
  0x5d   : > { %v4190_v2 = vpack.c.bf16 %v964_v29, %v960_v48  ;;  %v4194_v6 = vsub.f32 %v888_v13, %v964_v29  ;;  %v1048_v29 = vsub.f32 %v3989_v60, %v5260_v7  ;;  %v1037_v13 = vand.u32 4294901760, %v1036_v26 }
  0x5e   : > { %v1031_v48 = vand.u32 4294901760, %v1030_v27  ;;  %v1066_v7 = vsub.f32 %v4018_v17, %v5269_v39  ;;  %v5268_v26 = vand.u32 4294901760, %v4031_v31  ;;  %v1061_v27 = vand.u32 4294901760, %v1060_v1 }
  0x5f   : > { %5424 = vst [vmem:[#allocation20_spill] sm:$0xff] %v4190_v2  ;;  %3290 = vmatpush1.bf16.msra.mxu1 %v4190_v2  ;;  %v1049_v61 = vand.u32 4294901760, %v1048_v29  ;;  %v3291_v57 = vpack.c.bf16 %v1037_v13, %v1025_v12  ;;  %v5274_v13 = vand.u32 4294901760, %v4046_v45 }
  0x60   : > { %v4225_v2 = vpack.c.bf16 %v1043_v62, %v1031_v48  ;;  %v1067_v29 = vand.u32 4294901760, %v1066_v7  ;;  %v1084_v12 = vsub.f32 %v4031_v31, %v5268_v26  ;;  %v5273_v62 = vand.u32 4294901760, %v4039_v42 }
  0x61   : > { %3292 = vmatprep.subr.bf16.mxu1 %v3291_v57  ;;  %v4238_v48 = vpack.c.bf16 %v1061_v27, %v1049_v61  ;;  %v1078_v57 = vsub.f32 %v4037_v41, %v5270_v33  ;;  %v1073_v7 = vand.u32 4294901760, %v1072_v38  ;;  %v1096_v39 = vsub.f32 %v4046_v45, %v5274_v13 }
  0x62   : > { %v4240_v1 = vpack.c.bf16 %v1067_v29, %v1055_v32  ;;  %v1085_v8 = vand.u32 4294901760, %v1084_v12  ;;  %v1090_v26 = vsub.f32 %v4039_v42, %v5273_v62  ;;  %v1108_v27 = vsub.f32 %v4048_v49, %v5275_v58 }
  0x63   : > { %v1079_v61 = vand.u32 4294901760, %v1078_v57  ;;  %v5278_v32 = vand.u32 4294901760, %v4053_v51  ;;  %v5279_v29 = vand.u32 4294901760, %v4055_v52  ;;  %v1097_v12 = vand.u32 4294901760, %v1096_v39 }
  0x64   : > { %v4257_v33 = vpack.c.bf16 %v1085_v8, %v1073_v7  ;;  %v1091_v38 = vand.u32 4294901760, %v1090_v26  ;;  %v1109_v62 = vand.u32 4294901760, %v1108_v27  ;;  %v5285_v58 = vand.u32 4294901760, %v4148_v35 }
  0x65   : > { %v1102_v13 = vsub.f32 %v4053_v51, %v5278_v32  ;;  %v1114_v57 = vsub.f32 %v4055_v52, %v5279_v29  ;;  %v1120_v8 = vsub.f32 %v4146_v34, %v5282_v36  ;;  %v5286_v39 = vand.u32 4294901760, %v4151_v44 }
  0x66   : > { %v4267_v28 = vpack.c.bf16 %v1091_v38, %v1079_v61  ;;  %v5290_v26 = vand.u32 4294901760, %v4153_v47  ;;  %v4274_v7 = vpack.c.bf16 %v1109_v62, %v1097_v12  ;;  %v1132_v29 = vsub.f32 %v4148_v35, %v5285_v58 }
  0x67   : > { %v1103_v27 = vand.u32 4294901760, %v1102_v13  ;;  %v1115_v32 = vand.u32 4294901760, %v1114_v57  ;;  %v1121_v0 = vand.u32 4294901760, %v1120_v8  ;;  %v1126_v61 = vsub.f32 %v4151_v44, %v5286_v39 }
  0x68   : > { %v1138_v38 = vsub.f32 %v4153_v47, %v5290_v26  ;;  %v5289_v36 = vand.u32 4294901760, %v4155_v53  ;;  %v1133_v62 = vand.u32 4294901760, %v1132_v29  ;;  %v5293_v13 = vand.u32 4294901760, %v4157_v59 }
  0x69   : > { %v4286_v63 = vpack.c.bf16 %v1115_v32, %v1103_v27  ;;  %v5294_v12 = vand.u32 4294901760, %v4166_v14  ;;  %v1127_v57 = vand.u32 4294901760, %v1126_v61  ;;  %v5295_v39 = vand.u32 4294901760, %v4168_v16 }
  0x6a   : > { %v1139_v58 = vand.u32 4294901760, %v1138_v38  ;;  %v1144_v8 = vsub.f32 %v4155_v53, %v5289_v36  ;;  %v4294_v22 = vpack.c.bf16 %v1133_v62, %v1121_v0  ;;  %v1156_v32 = vsub.f32 %v4157_v59, %v5293_v13 }
  0x6b   : > { %v1150_v29 = vsub.f32 %v4166_v14, %v5294_v12  ;;  %v1162_v38 = vsub.f32 %v4168_v16, %v5295_v39  ;;  %v5296_v36 = vand.u32 4294901760, %v4170_v11  ;;  %v5301_v62 = vand.u32 4294901760, %v4172_v15 }
  0x6c   : > { %v4302_v27 = vpack.c.bf16 %v1139_v58, %v1127_v57  ;;  %v1145_v61 = vand.u32 4294901760, %v1144_v8  ;;  %v1157_v26 = vand.u32 4294901760, %v1156_v32  ;;  %v5303_v58 = vand.u32 4294901760, %v4176_v20 }
  0x6d   : > { %v1151_v0 = vand.u32 4294901760, %v1150_v29  ;;  %v1163_v13 = vand.u32 4294901760, %v1162_v38  ;;  %v1168_v12 = vsub.f32 %v4170_v11, %v5296_v36  ;;  %v1180_v8 = vsub.f32 %v4172_v15, %v5301_v62 }
  0x6e   : > { %v4314_v57 = vpack.c.bf16 %v1157_v26, %v1145_v61  ;;  %v1174_v32 = vsub.f32 %v4174_v19, %v5302_v21  ;;  %v1186_v38 = vsub.f32 %v4176_v20, %v5303_v58  ;;  %v5308_v36 = vand.u32 4294901760, %v4180_v37 }
  0x6f   : > { %v4322_v29 = vpack.c.bf16 %v1163_v13, %v1151_v0  ;;  %v1169_v39 = vand.u32 4294901760, %v1168_v12  ;;  %v1181_v50 = vand.u32 4294901760, %v1180_v8  ;;  %v5315_v61 = vand.u32 4294901760, %v4182_v46 }
  0x70   : > { %v1175_v26 = vand.u32 4294901760, %v1174_v32  ;;  %v1187_v62 = vand.u32 4294901760, %v1186_v38  ;;  %v1192_v21 = vsub.f32 %v4180_v37, %v5308_v36  ;;  %v5314_v13 = vand.u32 4294901760, %v4194_v6 }
  0x71   : > { %v3315_v12 = vpack.c.bf16 %v1181_v50, %v1169_v39  ;;  %v1204_v0 = vsub.f32 %v4182_v46, %v5315_v61  ;;  %v1198_v8 = vsub.f32 %v4192_v3, %v5313_v43  ;;  %v3323_v50 = vpack.c.bf16 %v3928_v24, %v3915_v18 }
  0x72   : > { %v3317_v32 = vpack.c.bf16 %v1187_v62, %v1175_v26  ;;  %v1193_v58 = vand.u32 4294901760, %v1192_v21  ;;  %v1210_v38 = vsub.f32 %v4194_v6, %v5314_v13  ;;  %v3325_v39 = vpack.c.bf16 %v3985_v56, %v3983_v55 }
  0x73   : > { %v1205_v40 = vand.u32 4294901760, %v1204_v0  ;;  %v1199_v25 = vand.u32 4294901760, %v1198_v8  ;;  %v3327_v43 = vpack.c.bf16 %v4003_v5, %v3989_v60  ;;  %v3329_v21 = vpack.c.bf16 %v4018_v17, %v4016_v10 }
  0x74   : > { %v1211_v36 = vand.u32 4294901760, %v1210_v38 }
  0x75   : > { %v3319_v9 = vpack.c.bf16 %v1205_v40, %v1193_v58  ;;  %v2869_v58 = vld [vmem:[%s5248_s2] ss:$0 sm:$0xff] }
  0x76   : > { %v3321_v4 = vpack.c.bf16 %v1211_v36, %v1199_v25 }
 0x124   : > { %v3210_v0 = vpop.f32.mrb[0].mxu0 }
 0x125   : > { %v3643_v40 = vadd.f32 %v3210_v0, %v2869_v58  ;;  %v842_v25 = vpop.f32.mrb[1].mxu0 }
 0x126   : > { %v3644_v8 = vadd.f32 %v2869_v58, %v842_v25 }
 0x127   : > { %vm853_vm1 = vcmp.gt.f32.partialorder %v3643_v40, 0.0  ;;  %v855_v26 = vmul.f32 0.2, %v3643_v40 }
 0x128   : > { %vm852_vm2 = vcmp.gt.f32.partialorder %v3644_v8, 0.0  ;;  %v854_v38 = vmul.f32 0.2, %v3644_v8 }
 0x129   : > { %v857_v62 = vsel %vm853_vm1, %v3643_v40, %v855_v26 }
 0x12a   : > { %v4378_v13 = vand.u32 4294901760, %v857_v62  ;;  %v856_v17 = vsel %vm852_vm2, %v3644_v8, %v854_v38  ;;  %v1839_v38 = vld [vmem:[%s5251_s5 + $0xa8] sm:$0xff] }
 0x12b   : > { %v4380_v61 = vand.u32 4294901760, %v856_v17 }
 0x12c   : > { %v4383_v36 = vsub.f32 %v857_v62, %v4378_v13  ;;  %v5425_v62 = vmov 0.0  }
 0x12d   : > { %v4386_v10 = vsub.f32 %v856_v17, %v4380_v61 }
 0x12e   : > { %v5318_v25 = vand.u32 4294901760, %v4383_v36 }
 0x12f   : > { %v5319_v0 = vand.u32 4294901760, %v4386_v10 }
 0x130   : > { %v1013_v40 = vsub.f32 %v4383_v36, %v5318_v25 }
 0x131   : > { %v1002_v58 = vsub.f32 %v4386_v10, %v5319_v0 }
 0x132   : > { %v1014_v17 = vand.u32 4294901760, %v1013_v40 }
 0x133   : > { %v1003_v26 = vand.u32 4294901760, %v1002_v58  ;;  %v1822_v58 = vld [vmem:[%s5251_s5 + $0x20] sm:$0xff] }
 0x135   : > { %1004 = vmatmul.mubr.f32.vlgmr.msra.gmra.mrb[0].mxu1 %v1003_v26  ;;  %v1823_v26 = vld [vmem:[%s5251_s5 + $0x28] sm:$0xff] }
 0x136   : > { %3294 = vmatpush1.bf16.msra.mxu1 %v4225_v2  ;;  %1009 = vmatprep.mubr.f32.mxu1 %v5425_v62 }
 0x137   : > { %3296 = vmatprep.subr.bf16.mxu1 %v4238_v48  ;;  %v1837_v48 = vld [vmem:[%s5251_s5 + $0x98] sm:$0xff] }
 0x139   : > { %1015 = vmatmul.mubr.f32.gmra.mrb[2].mxu1 %v1014_v17 }
 0x13a   : > { %3298 = vmatpush1.bf16.msra.mxu1 %v4240_v1  ;;  %1245 = vmatprep.mubr.f32.mxu1 %v5425_v62  ;;  %v5426_v1 = vpack.c.bf16 %v4031_v31, %v4029_v30 }
 0x13b   : > { %3300 = vmatprep.subr.bf16.mxu1 %v4257_v33  ;;  %v1836_v33 = vld [vmem:[%s5251_s5 + $0x90] sm:$0xff] }
 0x13e   : > { %3302 = vmatpush1.bf16.msra.mxu1 %v4267_v28 }
 0x13f   : > { %3304 = vmatprep.subr.bf16.mxu1 %v4274_v7 }
 0x142   : > { %3306 = vmatpush1.bf16.msra.mxu1 %v4286_v63  ;;  %v1835_v63 = vld [vmem:[%s5251_s5 + $0x88] sm:$0xff] }
 0x143   : > { %3308 = vmatprep.subr.bf16.mxu1 %v4294_v22  ;;  %v1834_v22 = vld [vmem:[%s5251_s5 + $0x80] sm:$0xff]  ;;  %v1909_v28 = vand.u32 4294901760, %v1835_v63 }
 0x146   : > { %3310 = vmatpush1.bf16.msra.mxu1 %v4302_v27  ;;  %v1912_v27 = vand.u32 4294901760, %v1836_v33 }
 0x147   : > { %3312 = vmatprep.subr.bf16.mxu1 %v4314_v57  ;;  %v1915_v57 = vand.u32 4294901760, %v1837_v48 }
 0x14a   : > { %3314 = vmatpush1.bf16.msra.mxu1 %v4322_v29  ;;  %v1820_v29 = vld [vmem:[%s5251_s5 + $0x10] sm:$0xff] }
 0x14b   : > { %3316 = vmatprep.subr.bf16.mxu1 %v3315_v12  ;;  %v1821_v12 = vld [vmem:[%s5251_s5 + $0x18] sm:$0xff] }
 0x14e   : > { %3318 = vmatpush1.bf16.msra.mxu1 %v3317_v32  ;;  %v1838_v32 = vld [vmem:[%s5251_s5 + $0xa0] sm:$0xff] }
 0x14f   : > { %3320 = vmatprep.subr.bf16.mxu1 %v3319_v9  ;;  %v1906_v9 = vand.u32 4294901760, %v1834_v22  ;;  %v1918_v25 = vand.u32 4294901760, %v1838_v32 }
 0x152   : > { %3322 = vmatpush1.bf16.msra.mxu1 %v3321_v4  ;;  %v1818_v4 = vld [vmem:[%s5251_s5] sm:$0xff] }
 0x153   : > { %3324 = vmatprep.subr.bf16.mxu1 %v3323_v50  ;;  %v1858_v2 = vand.u32 4294901760, %v1818_v4  ;;  %v4443_v50 = vpack.c.bf16 %v1909_v28, %v1906_v9 }
 0x155   : > { %1247 = vmatmul.mubr.f32.vlgmr.msra.gmra.mrb[0].mxu1 %v4380_v61  ;;  %5427 = vst [vmem:[#allocation21_spill] sm:$0xff] %v4443_v50  ;;  %v4449_v8 = vsub.f32 %v1818_v4, %v1858_v2  ;;  %v5435_v4 = vpack.c.bf16 %v4039_v42, %v4037_v41  ;;  %3452 = vmatprep.subr.bf16.mxu0 %v4443_v50 }
 0x156   : > { %3326 = vmatpush1.bf16.msra.mxu1 %v3325_v39  ;;  %1252 = vmatprep.mubr.f32.mxu1 %v5425_v62  ;;  %v4445_v39 = vsub.f32 %v1834_v22, %v1906_v9  ;;  %v4464_v22 = vpack.c.bf16 %v1915_v57, %v1912_v27  ;;  %v4471_v9 = vsub.f32 %v1837_v48, %v1915_v57  ;;  %v1841_v48 = vld [vmem:[%s5251_s5 + $0xb8] sm:$0xff]  ;;  %v1824_v57 = vld [vmem:[%s5251_s5 + $0x30] sm:$0xff] }
 0x157   : > { %3328 = vmatprep.subr.bf16.mxu1 %v3327_v43  ;;  %v1819_v43 = vld [vmem:[%s5251_s5 + $0x8] sm:$0xff]  ;;  %5430 = vst [vmem:[#allocation24_spill] sm:$0xff] %v4449_v8 }
 0x158   : > { %v1861_v7 = vand.u32 4294901760, %v1819_v43  ;;  %5428 = vst [vmem:[#allocation22_spill] sm:$0xff] %v4445_v39  ;;  %5433 = vst [vmem:[#allocation27_spill] sm:$0xff] %v4464_v22 }
 0x159   : > { %1254 = vmatmul.mubr.f32.gmra.mrb[2].mxu1 %v4378_v13  ;;  %5436 = vst [vmem:[#allocation29_spill] sm:$0xff] %v4471_v9  ;;  %v4491_v9 = vsub.f32 %v1838_v32, %v1918_v25  ;;  %v1927_v32 = vand.u32 4294901760, %v1841_v48 }
 0x15a   : > { %3330 = vmatpush1.bf16.msra.mxu1 %v3329_v21  ;;  %1388 = vmatprep.mubr.f32.mxu1 %v5425_v62  ;;  %v4447_v21 = vsub.f32 %v1835_v63, %v1909_v28  ;;  %v4460_v40 = vpack.c.bf16 %v1861_v7, %v1858_v2  ;;  %v4462_v17 = vsub.f32 %v1819_v43, %v1861_v7  ;;  %v1864_v28 = vand.u32 4294901760, %v1820_v29  ;;  %v1840_v43 = vld [vmem:[%s5251_s5 + $0xb0] sm:$0xff] }
 0x15b   : > { %3332 = vmatprep.subr.bf16.mxu1 %v5426_v1  ;;  %v4466_v63 = vsub.f32 %v1836_v33, %v1912_v27  ;;  %v1867_v1 = vand.u32 4294901760, %v1821_v12  ;;  %v5437_v2 = vpack.c.bf16 %v4048_v49, %v4046_v45  ;;  %v1921_v33 = vand.u32 4294901760, %v1839_v38  ;;  %5440 = vst [vmem:[#allocation32_spill] sm:$0xff] %v4491_v9 }
 0x15c   : > { %5429 = vst [vmem:[#allocation23_spill] sm:$0xff] %v4447_v21  ;;  %5431 = vst [vmem:[#allocation25_spill] sm:$0xff] %v4460_v40  ;;  %3454 = vmatpush3.bf16.msra.mxu0 %v4460_v40  ;;  %v1870_v7 = vand.u32 4294901760, %v1822_v58  ;;  %v1873_v27 = vand.u32 4294901760, %v1823_v26 }
 0x15d   : > { %5432 = vst [vmem:[#allocation26_spill] sm:$0xff] %v4462_v17  ;;  %5434 = vst [vmem:[#allocation28_spill] sm:$0xff] %v4466_v63  ;;  %v4489_v0 = vsub.f32 %v1821_v12, %v1867_v1  ;;  %3456 = vmatprep.subr.bf16.mxu0 %v4464_v22  ;;  %v1825_v63 = vld [vmem:[%s5251_s5 + $0x38] sm:$0xff]  ;;  %v4497_v17 = vpack.c.bf16 %v1867_v1, %v1864_v28  ;;  %v4499_v8 = vpack.c.bf16 %v1921_v33, %v1918_v25  ;;  %v1843_v25 = vld [vmem:[%s5251_s5 + $0xc8] sm:$0xff] }
 0x15e   : > { %3334 = vmatpush1.bf16.msra.mxu1 %v5435_v4  ;;  %v4487_v4 = vsub.f32 %v1820_v29, %v1864_v28  ;;  %v4501_v21 = vsub.f32 %v1839_v38, %v1921_v33  ;;  %v4503_v39 = vsub.f32 %v1822_v58, %v1870_v7  ;;  %v5445_v29 = vpack.c.bf16 %v4055_v52, %v4053_v51  ;;  %v1842_v28 = vld [vmem:[%s5251_s5 + $0xc0] sm:$0xff] }
 0x15f   : > { %3336 = vmatprep.subr.bf16.mxu1 %v5437_v2  ;;  %5439 = vst [vmem:[#allocation31_spill] sm:$0xff] %v4489_v0  ;;  %v1924_v2 = vand.u32 4294901760, %v1840_v43  ;;  %5441 = vst [vmem:[#allocation33_spill] sm:$0xff] %v4497_v17  ;;  %v4508_v12 = vsub.f32 %v1823_v26, %v1873_v27  ;;  %v1876_v0 = vand.u32 4294901760, %v1824_v57  ;;  %v5448_v38 = vpack.c.bf16 %v4148_v35, %v4146_v34  ;;  %v1826_v1 = vld [vmem:[%s5251_s5 + $0x40] sm:$0xff] }
 0x160   : > { %5438 = vst [vmem:[#allocation30_spill] sm:$0xff] %v4487_v4  ;;  %5442 = vst [vmem:[#allocation34_spill] sm:$0xff] %v4499_v8  ;;  %3458 = vmatpush3.bf16.msra.mxu0 %v4497_v17  ;;  %v1879_v58 = vand.u32 4294901760, %v1825_v63  ;;  %v1930_v26 = vand.u32 4294901760, %v1842_v28  ;;  %v4528_v33 = vsub.f32 %v1841_v48, %v1927_v32  ;;  %v5454_v4 = vpack.c.bf16 %v4153_v47, %v4151_v44 }
 0x161   : > { %5443 = vst [vmem:[#allocation35_spill] sm:$0xff] %v4501_v21  ;;  %5444 = vst [vmem:[#allocation36_spill] sm:$0xff] %v4503_v39  ;;  %v4510_v9 = vsub.f32 %v1840_v43, %v1924_v2  ;;  %v1827_v43 = vld [vmem:[%s5251_s5 + $0x48] sm:$0xff]  ;;  %3460 = vmatprep.subr.bf16.mxu0 %v4499_v8  ;;  %v4542_v17 = vpack.c.bf16 %v1927_v32, %v1924_v2  ;;  %v1828_v32 = vld [vmem:[%s5251_s5 + $0x50] sm:$0xff]  ;;  %v5494_v8 = vand.u32 4294901760, %v4386_v10 }
 0x162   : > { %3338 = vmatpush1.bf16.msra.mxu1 %v5445_v29  ;;  %5446 = vst [vmem:[#allocation37_spill] sm:$0xff] %v4508_v12  ;;  %5449 = vst [vmem:[#allocation39_spill] sm:$0xff] %v4528_v33  ;;  %v4530_v29 = vsub.f32 %v1824_v57, %v1876_v0  ;;  %v4533_v12 = vpack.c.bf16 %v1873_v27, %v1870_v7  ;;  %v4535_v39 = vsub.f32 %v1825_v63, %v1879_v58  ;;  %v1844_v7 = vld [vmem:[%s5251_s5 + $0xd0] sm:$0xff]  ;;  %v1845_v63 = vld [vmem:[%s5251_s5 + $0xd8] sm:$0xff] }
 0x163   : > { %5447 = vst [vmem:[#allocation38_spill] sm:$0xff] %v4510_v9  ;;  %3340 = vmatprep.subr.bf16.mxu1 %v5448_v38  ;;  %v1933_v9 = vand.u32 4294901760, %v1843_v25  ;;  %v1882_v38 = vand.u32 4294901760, %v1826_v1  ;;  %v4537_v21 = vsub.f32 %v1842_v28, %v1930_v26  ;;  %5455 = vst [vmem:[#allocation44_spill] sm:$0xff] %v4542_v17  ;;  %v1885_v57 = vand.u32 4294901760, %v1827_v43  ;;  %v1829_v28 = vld [vmem:[%s5251_s5 + $0x58] sm:$0xff] }
 0x164   : > { %5450 = vst [vmem:[#allocation40_spill] sm:$0xff] %v4530_v29  ;;  %5451 = vst [vmem:[#allocation41_spill] sm:$0xff] %v4533_v12  ;;  %v5458_v27 = vpack.c.bf16 %v4157_v59, %v4155_v53  ;;  %3462 = vmatpush3.bf16.msra.mxu0 %v4533_v12  ;;  %v1939_v2 = vand.u32 4294901760, %v1845_v63 }
 0x165   : > { %5452 = vst [vmem:[#allocation42_spill] sm:$0xff] %v4535_v39  ;;  %5453 = vst [vmem:[#allocation43_spill] sm:$0xff] %v4537_v21  ;;  %v4544_v48 = vsub.f32 %v1843_v25, %v1933_v9  ;;  %v4546_v29 = vsub.f32 %v1826_v1, %v1882_v38  ;;  %v4564_v25 = vsub.f32 %v1827_v43, %v1885_v57  ;;  %3464 = vmatprep.subr.bf16.mxu0 %v4542_v17 }
 0x166   : > { %3342 = vmatpush1.bf16.msra.mxu1 %v5454_v4  ;;  %v1936_v4 = vand.u32 4294901760, %v1844_v7  ;;  %v1888_v1 = vand.u32 4294901760, %v1828_v32  ;;  %v4571_v21 = vsub.f32 %v1845_v63, %v1939_v2  ;;  %v5463_v39 = vpack.c.bf16 %v4168_v16, %v4166_v14  ;;  %v5477_v63 = vld [vmem:[#allocation10_spill] sm:$0xff] }
 0x167   : > { %5456 = vst [vmem:[#allocation45_spill] sm:$0xff] %v4544_v48  ;;  %5457 = vst [vmem:[#allocation46_spill] sm:$0xff] %v4546_v29  ;;  %3344 = vmatprep.subr.bf16.mxu1 %v5458_v27  ;;  %v1891_v29 = vand.u32 4294901760, %v1829_v28  ;;  %v4567_v48 = vpack.c.bf16 %v1879_v58, %v1876_v0  ;;  %v4576_v33 = vpack.c.bf16 %v1933_v9, %v1930_v26 }
 0x168   : > { %5459 = vst [vmem:[#allocation47_spill] sm:$0xff] %v4564_v25  ;;  %v4569_v27 = vsub.f32 %v1844_v7, %v1936_v4  ;;  %5462 = vst [vmem:[#allocation50_spill] sm:$0xff] %v4571_v21  ;;  %v4578_v12 = vsub.f32 %v1828_v32, %v1888_v1  ;;  %v5467_v25 = vpack.c.bf16 %v4172_v15, %v4170_v11  ;;  %v5476_v7 = vld [vmem:[#allocation9_spill] sm:$0xff] }
 0x169   : > { %5460 = vst [vmem:[#allocation48_spill] sm:$0xff] %v4567_v48  ;;  %5464 = vst [vmem:[#allocation51_spill] sm:$0xff] %v4576_v33  ;;  %v4580_v43 = vsub.f32 %v1829_v28, %v1891_v29  ;;  %3466 = vmatpush3.bf16.msra.mxu0 %v4567_v48  ;;  %v4587_v0 = vpack.c.bf16 %v1885_v57, %v1882_v38  ;;  %v5469_v58 = vpack.c.bf16 %v4176_v20, %v4174_v19  ;;  %v5474_v57 = vld [vmem:[#allocation5_spill] sm:$0xff]  ;;  %v5481_v28 = vld [vmem:[#allocation14_spill] sm:$0xff] }
 0x16a   : > { %5461 = vst [vmem:[#allocation49_spill] sm:$0xff] %v4569_v27  ;;  %3346 = vmatpush1.bf16.msra.mxu1 %v5463_v39  ;;  %5465 = vst [vmem:[#allocation52_spill] sm:$0xff] %v4578_v12  ;;  %3468 = vmatprep.subr.bf16.mxu0 %v4576_v33  ;;  %v4592_v39 = vpack.c.bf16 %v1939_v2, %v1936_v4  ;;  %v5471_v9 = vpack.c.bf16 %v4182_v46, %v4180_v37  ;;  %v5478_v4 = vld [vmem:[#allocation11_spill] sm:$0xff]  ;;  %v5479_v2 = vld [vmem:[#allocation12_spill] sm:$0xff]  ;;  %v5488_v12 = vand.u32 4294901760, %v3928_v24 }
 0x16b   : > { %5466 = vst [vmem:[#allocation53_spill] sm:$0xff] %v4580_v43  ;;  %3348 = vmatprep.subr.bf16.mxu1 %v5467_v25  ;;  %5468 = vst [vmem:[#allocation54_spill] sm:$0xff] %v4587_v0  ;;  %v4599_v26 = vpack.c.bf16 %v1891_v29, %v1888_v1  ;;  %v5473_v38 = vpack.c.bf16 %v4194_v6, %v4192_v3  ;;  %v5475_v29 = vld [vmem:[#allocation6_spill] sm:$0xff]  ;;  %v5480_v32 = vld [vmem:[#allocation13_spill] sm:$0xff]  ;;  %v5487_v43 = vand.u32 4294901760, %v3915_v18  ;;  %v5492_v33 = vand.u32 4294901760, %v3989_v60 }
 0x16c   : > { %5470 = vst [vmem:[#allocation55_spill] sm:$0xff] %v4592_v39  ;;  %v5482_v25 = vld [vmem:[#allocation15_spill] sm:$0xff]  ;;  %v5483_v1 = vld [vmem:[#allocation16_spill] sm:$0xff]  ;;  %v5493_v48 = vand.u32 4294901760, %v4003_v5  ;;  %v5501_v5 = vand.u32 4294901760, %v4383_v36 }
 0x16d   : > { %3470 = vmatpush3.bf16.msra.mxu0 %v4587_v0  ;;  %5472 = vst [vmem:[#allocation56_spill] sm:$0xff] %v4599_v26  ;;  %v3387_v21 = vpack.c.bf16 %v5488_v12, %v5487_v43  ;;  %v5489_v27 = vld [vmem:[#allocation20_spill] sm:$0xff]  ;;  %v5495_v18 = vld [vmem:[#allocation7_spill] sm:$0xff] }
 0x16e   : > { %3350 = vmatpush1.bf16.msra.mxu1 %v5469_v58  ;;  %3472 = vmatprep.subr.bf16.mxu0 %v4592_v39  ;;  %v5484_v58 = vld [vmem:[#allocation17_spill] sm:$0xff]  ;;  %v5491_v39 = vand.u32 4294901760, %v3985_v56  ;;  %v3391_v17 = vpack.c.bf16 %v5493_v48, %v5492_v33  ;;  %v5496_v24 = vand.u32 4294901760, %v5495_v18  ;;  %v5497_v12 = vld [vmem:[#allocation8_spill] sm:$0xff]  ;;  %v5499_v56 = vand.u32 4294901760, %v4029_v30 }
 0x16f   : > { %3352 = vmatprep.subr.bf16.mxu1 %v5471_v9  ;;  %v5485_v9 = vld [vmem:[#allocation18_spill] sm:$0xff]  ;;  %v5498_v43 = vand.u32 4294901760, %v5497_v12  ;;  %v5504_v48 = vand.u32 4294901760, %v4046_v45  ;;  %v5511_v45 = vand.u32 4294901760, %v4153_v47  ;;  %v5518_v47 = vand.u32 4294901760, %v4174_v19  ;;  %v5527_v19 = vld [vmem:[#allocation44_spill] sm:$0xff] }
 0x171   : > { %3474 = vmatpush3.bf16.msra.mxu0 %v4599_v26  ;;  %v5490_v26 = vand.u32 4294901760, %v3983_v55  ;;  %v3393_v55 = vpack.c.bf16 %v5498_v43, %v5496_v24 }
 0x172   : > { %3354 = vmatpush1.bf16.msra.mxu1 %v5473_v38  ;;  %v5486_v38 = vld [vmem:[#allocation19_spill] sm:$0xff] }
 0x173   : > { %3356 = vmatprep.subr.bf16.mxu1 %v3926_v23  ;;  %v3389_v0 = vpack.c.bf16 %v5491_v39, %v5490_v26  ;;  %v5510_v26 = vand.u32 4294901760, %v4151_v44  ;;  %v5517_v44 = vand.u32 4294901760, %v4172_v15  ;;  %v5526_v15 = vld [vmem:[#allocation41_spill] sm:$0xff] }
 0x175   : > { %1391 = vmatmul.mubr.f32.vlgmr.msra.gmra.mrb[0].mxu1 %v4386_v10  ;;  %v5502_v10 = vand.u32 4294901760, %v4037_v41  ;;  %v5508_v41 = vand.u32 4294901760, %v4146_v34  ;;  %v3405_v18 = vpack.c.bf16 %v5511_v45, %v5510_v26  ;;  %v5515_v34 = vand.u32 4294901760, %v4168_v16 }
 0x176   : > { %3358 = vmatpush1.bf16.msra.mxu1 %v3981_v54  ;;  %1396 = vmatprep.mubr.f32.mxu1 %v5425_v62  ;;  %v5522_v16 = vand.u32 4294901760, %v4192_v3  ;;  %v5531_v3 = vld [vmem:[#allocation55_spill] sm:$0xff] }
 0x177   : > { %3360 = vmatprep.subr.bf16.mxu1 %v5474_v57 }
 0x179   : > { %1399 = vmatmul.mubr.f32.gmra.mrb[2].mxu1 %v4383_v36  ;;  %v5507_v36 = vand.u32 4294901760, %v4055_v52  ;;  %v5514_v52 = vand.u32 4294901760, %v4166_v14  ;;  %v5521_v14 = vand.u32 4294901760, %v4182_v46  ;;  %v5530_v46 = vld [vmem:[#allocation54_spill] sm:$0xff] }
 0x17a   : > { %3362 = vmatpush1.bf16.msra.mxu1 %v5475_v29  ;;  %1501 = vmatprep.mubr.f32.mxu1 %v5425_v62 }
 0x17b   : > { %3364 = vmatprep.subr.bf16.mxu1 %v5476_v7  ;;  %v3409_v12 = vpack.c.bf16 %v5515_v34, %v5514_v52 }
 0x17e   : > { %3366 = vmatpush1.bf16.msra.mxu1 %v5477_v63 }
 0x17f   : > { %3368 = vmatprep.subr.bf16.mxu1 %v5478_v4 }
 0x182   : > { %3370 = vmatpush1.bf16.msra.mxu1 %v5479_v2 }
 0x183   : > { %3372 = vmatprep.subr.bf16.mxu1 %v5480_v32 }
 0x186   : > { %3374 = vmatpush1.bf16.msra.mxu1 %v5481_v28 }
 0x187   : > { %3376 = vmatprep.subr.bf16.mxu1 %v5482_v25 }
 0x18a   : > { %3378 = vmatpush1.bf16.msra.mxu1 %v5483_v1 }
 0x18b   : > { %3380 = vmatprep.subr.bf16.mxu1 %v5484_v58 }
 0x18e   : > { %3382 = vmatpush1.bf16.msra.mxu1 %v5485_v9 }
 0x18f   : > { %3384 = vmatprep.subr.bf16.mxu1 %v5486_v38 }
 0x192   : > { %3386 = vmatpush1.bf16.msra.mxu1 %v5489_v27 }
 0x193   : > { %3388 = vmatprep.subr.bf16.mxu1 %v3387_v21  ;;  %v5500_v21 = vand.u32 4294901760, %v4031_v31  ;;  %v5506_v31 = vand.u32 4294901760, %v4053_v51  ;;  %v5513_v51 = vand.u32 4294901760, %v4157_v59  ;;  %v5520_v59 = vand.u32 4294901760, %v4180_v37  ;;  %v5529_v37 = vld [vmem:[#allocation51_spill] sm:$0xff] }
 0x195   : > { %1505 = vmatmul.mubr.f32.vlgmr.msra.gmra.mrb[0].mxu1 %v5494_v8  ;;  %v3395_v60 = vpack.c.bf16 %v5500_v21, %v5499_v56  ;;  %v5503_v8 = vand.u32 4294901760, %v4039_v42  ;;  %v5509_v42 = vand.u32 4294901760, %v4148_v35  ;;  %v5516_v35 = vand.u32 4294901760, %v4170_v11 }
 0x196   : > { %3390 = vmatpush1.bf16.msra.mxu1 %v3389_v0  ;;  %1510 = vmatprep.mubr.f32.mxu1 %v5425_v62  ;;  %v3401_v0 = vpack.c.bf16 %v5507_v36, %v5506_v31  ;;  %v3415_v56 = vpack.c.bf16 %v5521_v14, %v5520_v59  ;;  %v5523_v11 = vand.u32 4294901760, %v4194_v6  ;;  %v5532_v6 = vld [vmem:[#allocation56_spill] sm:$0xff]  ;;  %v5538_v36 = vld [vmem:[#allocation23_spill] sm:$0xff]  ;;  %v5545_v59 = vld [vmem:[#allocation29_spill] sm:$0xff] }
 0x197   : > { %3392 = vmatprep.subr.bf16.mxu1 %v3391_v17  ;;  %v3397_v33 = vpack.c.bf16 %v5503_v8, %v5502_v10  ;;  %v5505_v17 = vand.u32 4294901760, %v4048_v49  ;;  %v3403_v39 = vpack.c.bf16 %v5509_v42, %v5508_v41  ;;  %v5512_v49 = vand.u32 4294901760, %v4155_v53  ;;  %v5539_v41 = vld [vmem:[#allocation24_spill] sm:$0xff] }
 0x198   : > { %v3411_v43 = vpack.c.bf16 %v5517_v44, %v5516_v35  ;;  %v5519_v53 = vand.u32 4294901760, %v4176_v20  ;;  %v3417_v21 = vpack.c.bf16 %v5523_v11, %v5522_v16  ;;  %v5528_v20 = vld [vmem:[#allocation48_spill] sm:$0xff]  ;;  %v5372_v42 = vand.u32 4294901760, %v5539_v41  ;;  %v5547_v11 = vld [vmem:[#allocation31_spill] sm:$0xff] }
 0x199   : > { %1514 = vmatmul.mubr.f32.gmra.mrb[2].mxu1 %v5501_v5  ;;  %v3399_v30 = vpack.c.bf16 %v5505_v17, %v5504_v48  ;;  %v3407_v24 = vpack.c.bf16 %v5513_v51, %v5512_v49  ;;  %v5368_v14 = vand.u32 4294901760, %v5545_v59 }
 0x19a   : > { %3394 = vmatpush1.bf16.msra.mxu1 %v3393_v55  ;;  %1680 = vmatprep.mubr.f32.mxu1 %v5425_v62  ;;  %v3413_v55 = vpack.c.bf16 %v5519_v53, %v5518_v47  ;;  %v1988_v49 = vsub.f32 %v5539_v41, %v5372_v42  ;;  %v5544_v53 = vld [vmem:[#allocation28_spill] sm:$0xff] }
 0x19b   : > { %3396 = vmatprep.subr.bf16.mxu1 %v3395_v60 }
 0x19e   : > { %3398 = vmatpush1.bf16.msra.mxu1 %v3397_v33 }
 0x19f   : > { %3400 = vmatprep.subr.bf16.mxu1 %v3399_v30  ;;  %v5537_v30 = vld [vmem:[#allocation22_spill] sm:$0xff] }
 0x1a0   : > { %v5377_v31 = vand.u32 4294901760, %v5537_v30 }
 0x1a2   : > { %3402 = vmatpush1.bf16.msra.mxu1 %v3401_v0  ;;  %v5375_v0 = vand.u32 4294901760, %v5538_v36  ;;  %v2100_v45 = vsub.f32 %v5537_v30, %v5377_v31 }
 0x1a3   : > { %3404 = vmatprep.subr.bf16.mxu1 %v3403_v39  ;;  %v5540_v39 = vld [vmem:[#allocation26_spill] sm:$0xff] }
 0x1a4   : > { %v5371_v26 = vand.u32 4294901760, %v5540_v39  ;;  %v2101_v35 = vand.u32 4294901760, %v2100_v45  ;;  %v5550_v45 = vld [vmem:[#allocation36_spill] sm:$0xff] }
 0x1a6   : > { %3406 = vmatpush1.bf16.msra.mxu1 %v3405_v18  ;;  %v2107_v18 = vsub.f32 %v5538_v36, %v5375_v0  ;;  %v1995_v51 = vsub.f32 %v5540_v39, %v5371_v26  ;;  %v5558_v0 = vld [vmem:[#allocation46_spill] sm:$0xff] }
 0x1a7   : > { %3408 = vmatprep.subr.bf16.mxu1 %v3407_v24 }
 0x1a8   : > { %v2108_v44 = vand.u32 4294901760, %v2107_v18  ;;  %v1996_v47 = vand.u32 4294901760, %v1995_v51  ;;  %v5366_v18 = vand.u32 4294901760, %v5550_v45 }
 0x1aa   : > { %3410 = vmatpush1.bf16.msra.mxu1 %v3409_v12 }
 0x1ab   : > { %3412 = vmatprep.subr.bf16.mxu1 %v3411_v43  ;;  %v1989_v43 = vand.u32 4294901760, %v1988_v49  ;;  %v5551_v49 = vld [vmem:[#allocation37_spill] sm:$0xff] }
 0x1ac   : > { %v5365_v51 = vand.u32 4294901760, %v5551_v49 }
 0x1ae   : > { %3414 = vmatpush1.bf16.msra.mxu1 %v3413_v55  ;;  %v5369_v55 = vand.u32 4294901760, %v5544_v53 }
 0x1af   : > { %3416 = vmatprep.subr.bf16.mxu1 %v3415_v56  ;;  %v5546_v56 = vld [vmem:[#allocation30_spill] sm:$0xff] }
 0x1b0   : > { %v5367_v16 = vand.u32 4294901760, %v5546_v56 }
 0x1b2   : > { %3418 = vmatpush1.bf16.msra.mxu1 %v3417_v21  ;;  %v5364_v21 = vand.u32 4294901760, %v5547_v11 }
 0x1b3   : > { %3420 = vmatprep.subr.bf16.mxu1 %v3926_v23  ;;  %v5524_v23 = vld [vmem:[#allocation33_spill] sm:$0xff] }
 0x1b5   : > { %1682 = vmatmul.mubr.f32.vlgmr.msra.gmra.mrb[0].mxu1 %v4380_v61 }
 0x1b6   : > { %3422 = vmatpush1.bf16.msra.mxu1 %v3981_v54  ;;  %1687 = vmatprep.mubr.f32.mxu1 %v5425_v62  ;;  %v5525_v54 = vld [vmem:[#allocation34_spill] sm:$0xff] }
 0x1b7   : > { %3424 = vmatprep.subr.bf16.mxu1 %v5474_v57  ;;  %v1830_v57 = vld [vmem:[%s5251_s5 + $0x60] sm:$0xff] }
 0x1b9   : > { %1689 = vmatmul.mubr.f32.gmra.mrb[2].mxu1 %v4378_v13 }
 0x1ba   : > { %3426 = vmatpush1.bf16.msra.mxu1 %v5475_v29  ;;  %1791 = vmatprep.mubr.f32.mxu1 %v5425_v62  ;;  %v1831_v29 = vld [vmem:[%s5251_s5 + $0x68] sm:$0xff] }
 0x1bb   : > { %3428 = vmatprep.subr.bf16.mxu1 %v5476_v7  ;;  %v1894_v7 = vand.u32 4294901760, %v1830_v57 }
 0x1bd   : > { %v4774_v48 = vsub.f32 %v1830_v57, %v1894_v7  ;;  %v2002_v57 = vsub.f32 %v5546_v56, %v5367_v16 }
 0x1be   : > { %3430 = vmatpush1.bf16.msra.mxu1 %v5477_v63  ;;  %v1897_v63 = vand.u32 4294901760, %v1831_v29 }
 0x1bf   : > { %3432 = vmatprep.subr.bf16.mxu1 %v5478_v4 }
 0x1c0   : > { %v4776_v17 = vsub.f32 %v1831_v29, %v1897_v63  ;;  %v2009_v29 = vsub.f32 %v5547_v11, %v5364_v21 }
 0x1c2   : > { %3434 = vmatpush1.bf16.msra.mxu1 %v5479_v2  ;;  %v4744_v2 = vpack.c.bf16 %v1897_v63, %v1894_v7  ;;  %v5548_v7 = vld [vmem:[#allocation32_spill] sm:$0xff] }
 0x1c3   : > { %3436 = vmatprep.subr.bf16.mxu1 %v5480_v32  ;;  %v1848_v32 = vld [vmem:[%s5251_s5 + $0xf0] sm:$0xff]  ;;  %v5363_v63 = vand.u32 4294901760, %v5548_v7 }
 0x1c4   : > { %5534 = vst [vmem:[#allocation6_spill] sm:$0xff] %v4744_v2 }
 0x1c6   : > { %3438 = vmatpush1.bf16.msra.mxu1 %v5481_v28  ;;  %v1849_v28 = vld [vmem:[%s5251_s5 + $0xf8] sm:$0xff] }
 0x1c7   : > { %3440 = vmatprep.subr.bf16.mxu1 %v5482_v25  ;;  %v1948_v25 = vand.u32 4294901760, %v1848_v32 }
 0x1c9   : > { %v4794_v24 = vsub.f32 %v1848_v32, %v1948_v25  ;;  %v5549_v32 = vld [vmem:[#allocation35_spill] sm:$0xff] }
 0x1ca   : > { %3442 = vmatpush1.bf16.msra.mxu1 %v5483_v1  ;;  %v1951_v1 = vand.u32 4294901760, %v1849_v28 }
 0x1cb   : > { %3444 = vmatprep.subr.bf16.mxu1 %v5484_v58  ;;  %v1832_v58 = vld [vmem:[%s5251_s5 + $0x70] sm:$0xff]  ;;  %5541 = vst [vmem:[#allocation11_spill] sm:$0xff] %v4794_v24 }
 0x1cc   : > { %v4762_v5 = vpack.c.bf16 %v1951_v1, %v1948_v25  ;;  %v4796_v52 = vsub.f32 %v1849_v28, %v1951_v1  ;;  %v5362_v28 = vand.u32 4294901760, %v5549_v32 }
 0x1ce   : > { %3446 = vmatpush1.bf16.msra.mxu1 %v5485_v9  ;;  %v1833_v9 = vld [vmem:[%s5251_s5 + $0x78] sm:$0xff]  ;;  %5535 = vst [vmem:[#allocation9_spill] sm:$0xff] %v4762_v5 }
 0x1cf   : > { %3448 = vmatprep.subr.bf16.mxu1 %v5486_v38  ;;  %v1900_v38 = vand.u32 4294901760, %v1832_v58  ;;  %v1903_v60 = vand.u32 4294901760, %v1833_v9 }
 0x1d1   : > { %v4764_v10 = vpack.c.bf16 %v1903_v60, %v1900_v38  ;;  %v4798_v34 = vsub.f32 %v1832_v58, %v1900_v38  ;;  %v4800_v12 = vsub.f32 %v1833_v9, %v1903_v60  ;;  %v2003_v58 = vand.u32 4294901760, %v2002_v57 }
 0x1d2   : > { %3450 = vmatpush1.bf16.msra.mxu1 %v5489_v27  ;;  %v2010_v9 = vand.u32 4294901760, %v2009_v29  ;;  %v2128_v38 = vsub.f32 %v5548_v7, %v5363_v63  ;;  %v2135_v60 = vsub.f32 %v5549_v32, %v5362_v28  ;;  %v5553_v29 = vld [vmem:[#allocation39_spill] sm:$0xff]  ;;  %v5554_v63 = vld [vmem:[#allocation40_spill] sm:$0xff] }
 0x1d3   : > { %3612 = vmatprep.subr.bf16.mxu1 %v4443_v50  ;;  %5536 = vst [vmem:[#allocation10_spill] sm:$0xff] %v4764_v10  ;;  %5542 = vst [vmem:[#allocation12_spill] sm:$0xff] %v4798_v34  ;;  %v5373_v28 = vand.u32 4294901760, %v5553_v29  ;;  %v5374_v21 = vand.u32 4294901760, %v5554_v63 }
 0x1d4   : > { %5543 = vst [vmem:[#allocation13_spill] sm:$0xff] %v4800_v12 }
 0x1d5   : > { %1793 = vmatmul.mubr.f32.vlgmr.msra.gmra.mrb[0].mxu1 %v4380_v61  ;;  %v1846_v61 = vld [vmem:[%s5251_s5 + $0xe0] sm:$0xff] }
 0x1d6   : > { %1798 = vmatprep.mubr.f32.mxu1 %v5425_v62  ;;  %3614 = vmatpush3.bf16.msra.mxu1 %v4460_v40  ;;  %v1942_v62 = vand.u32 4294901760, %v1846_v61 }
 0x1d7   : > { %3616 = vmatprep.subr.bf16.mxu1 %v4464_v22 }
 0x1d8   : > { %v4770_v8 = vsub.f32 %v1846_v61, %v1942_v62  ;;  %v3483_v61 = vpack.c.bf16 %v2108_v44, %v2101_v35  ;;  %v4832_v44 = vpack.c.bf16 %v2010_v9, %v2003_v58 }
 0x1d9   : > { %1800 = vmatmul.mubr.f32.gmra.mrb[2].mxu1 %v4378_v13  ;;  %v1847_v13 = vld [vmem:[%s5251_s5 + $0xe8] sm:$0xff] }
 0x1da   : > { %3618 = vmatpush3.bf16.msra.mxu1 %v5524_v23  ;;  %v1945_v27 = vand.u32 4294901760, %v1847_v13 }
 0x1db   : > { %3620 = vmatprep.subr.bf16.mxu1 %v5525_v54 }
 0x1dc   : > { %v4742_v4 = vpack.c.bf16 %v1945_v27, %v1942_v62  ;;  %v4772_v33 = vsub.f32 %v1847_v13, %v1945_v27  ;;  %v4806_v13 = vpack.c.bf16 %v1996_v47, %v1989_v43  ;;  %v2114_v62 = vsub.f32 %v5544_v53, %v5369_v55 }
 0x1dd   : > { %v2121_v27 = vsub.f32 %v5545_v59, %v5368_v14  ;;  %v2129_v43 = vand.u32 4294901760, %v2128_v38  ;;  %v2136_v47 = vand.u32 4294901760, %v2135_v60 }
 0x1de   : > { %3622 = vmatpush3.bf16.msra.mxu1 %v5526_v15  ;;  %5533 = vst [vmem:[#allocation5_spill] sm:$0xff] %v4742_v4  ;;  %3476 = vmatprep.subr.bf16.mxu0 %v4742_v4  ;;  %v2115_v25 = vand.u32 4294901760, %v2114_v62  ;;  %v2023_v62 = vsub.f32 %v5551_v49, %v5365_v51  ;;  %v2149_v51 = vsub.f32 %v5553_v29, %v5373_v28 }
 0x1df   : > { %3624 = vmatprep.subr.bf16.mxu1 %v5527_v19  ;;  %3478 = vmatpush3.bf16.msra.mxu0 %v4744_v2  ;;  %v2122_v1 = vand.u32 4294901760, %v2121_v27  ;;  %v5552_v27 = vld [vmem:[#allocation38_spill] sm:$0xff]  ;;  %v4844_v58 = vpack.c.bf16 %v2136_v47, %v2129_v43  ;;  %v5556_v47 = vld [vmem:[#allocation43_spill] sm:$0xff]  ;;  %v5396_v19 = vand.u32 4294901760, %v4798_v34 }
 0x1e0   : > { %3480 = vmatprep.subr.bf16.mxu0 %v4762_v5  ;;  %v5370_v57 = vand.u32 4294901760, %v5552_v27  ;;  %v2024_v38 = vand.u32 4294901760, %v2023_v62  ;;  %v5557_v62 = vld [vmem:[#allocation45_spill] sm:$0xff] }
 0x1e1   : > { %v4830_v35 = vpack.c.bf16 %v2122_v1, %v2115_v25  ;;  %v5555_v25 = vld [vmem:[#allocation42_spill] sm:$0xff]  ;;  %v5380_v14 = vand.u32 4294901760, %v5557_v62 }
 0x1e2   : > { %3626 = vmatpush3.bf16.msra.mxu1 %v5528_v20  ;;  %v5376_v1 = vand.u32 4294901760, %v5555_v25  ;;  %v2142_v60 = vsub.f32 %v5552_v27, %v5370_v57  ;;  %v2150_v57 = vand.u32 4294901760, %v2149_v51 }
 0x1e3   : > { %3628 = vmatprep.subr.bf16.mxu1 %v5529_v37  ;;  %3482 = vmatpush3.bf16.msra.mxu0 %v4764_v10 }
 0x1e4   : > { %3484 = vmatprep.subr.bf16.mxu0 %v3483_v61  ;;  %v2016_v61 = vsub.f32 %v5550_v45, %v5366_v18  ;;  %v2030_v18 = vsub.f32 %v5554_v63, %v5374_v21  ;;  %v2037_v16 = vsub.f32 %v5555_v25, %v5376_v1  ;;  %v2143_v55 = vand.u32 4294901760, %v2142_v60 }
 0x1e5   : > { %v2163_v21 = vsub.f32 %v5557_v62, %v5380_v14  ;;  %v5385_v1 = vand.u32 4294901760, %v5558_v0 }
 0x1e6   : > { %3630 = vmatpush3.bf16.msra.mxu1 %v5530_v46  ;;  %v2017_v9 = vand.u32 4294901760, %v2016_v61  ;;  %v5379_v61 = vand.u32 4294901760, %v5556_v47  ;;  %v2031_v26 = vand.u32 4294901760, %v2030_v18  ;;  %v2038_v42 = vand.u32 4294901760, %v2037_v16 }
 0x1e7   : > { %3632 = vmatprep.subr.bf16.mxu1 %v5531_v3  ;;  %v4870_v31 = vpack.c.bf16 %v2150_v57, %v2143_v55  ;;  %v2164_v51 = vand.u32 4294901760, %v2163_v21  ;;  %v2044_v16 = vsub.f32 %v5558_v0, %v5385_v1  ;;  %v5563_v55 = vld [vmem:[#allocation53_spill] sm:$0xff] }
 0x1e8   : > { %v4858_v43 = vpack.c.bf16 %v2024_v38, %v2017_v9  ;;  %v2156_v28 = vsub.f32 %v5556_v47, %v5379_v61  ;;  %v5559_v9 = vld [vmem:[#allocation47_spill] sm:$0xff]  ;;  %v5560_v61 = vld [vmem:[#allocation49_spill] sm:$0xff]  ;;  %v5389_v57 = vand.u32 4294901760, %v5563_v55 }
 0x1e9   : > { %v5384_v38 = vand.u32 4294901760, %v5559_v9  ;;  %v5386_v14 = vand.u32 4294901760, %v5560_v61 }
 0x1ea   : > { %3634 = vmatpush3.bf16.msra.mxu1 %v5532_v6  ;;  %v2157_v60 = vand.u32 4294901760, %v2156_v28  ;;  %v2065_v3 = vsub.f32 %v5563_v55, %v5389_v57  ;;  %v5393_v57 = vand.u32 4294901760, %v4774_v48 }
 0x1eb   : > { %3636 = vmatprep.subr.bf16.mxu1 %v4742_v4  ;;  %v2051_v18 = vsub.f32 %v5559_v9, %v5384_v38  ;;  %v5562_v4 = vld [vmem:[#allocation52_spill] sm:$0xff]  ;;  %v2170_v28 = vsub.f32 %v5560_v61, %v5386_v14 }
 0x1ec   : > { %v5388_v6 = vand.u32 4294901760, %v5562_v4  ;;  %v2066_v37 = vand.u32 4294901760, %v2065_v3  ;;  %v2072_v3 = vsub.f32 %v4774_v48, %v5393_v57 }
 0x1ed   : > { %v2052_v21 = vand.u32 4294901760, %v2051_v18  ;;  %v2171_v18 = vand.u32 4294901760, %v2170_v28 }
 0x1ee   : > { %3638 = vmatpush3.bf16.msra.mxu1 %v4744_v2  ;;  %v2058_v1 = vsub.f32 %v5562_v4, %v5388_v6 }
 0x1ef   : > { %3640 = vmatprep.subr.bf16.mxu1 %v4762_v5  ;;  %v5561_v5 = vld [vmem:[#allocation50_spill] sm:$0xff] }
 0x1f0   : > { %v5387_v2 = vand.u32 4294901760, %v5561_v5  ;;  %v2059_v46 = vand.u32 4294901760, %v2058_v1 }
 0x1f2   : > { %3642 = vmatpush3.bf16.msra.mxu1 %v4764_v10  ;;  %v4872_v10 = vpack.c.bf16 %v2038_v42, %v2031_v26  ;;  %v4884_v42 = vpack.c.bf16 %v2164_v51, %v2157_v60  ;;  %v2045_v26 = vand.u32 4294901760, %v2044_v16  ;;  %v2177_v38 = vsub.f32 %v5561_v5, %v5387_v2 }
 0x1f3   : > { %v5391_v51 = vand.u32 4294901760, %v4770_v8  ;;  %v5390_v16 = vand.u32 4294901760, %v4772_v33  ;;  %v4912_v20 = vpack.c.bf16 %v2066_v37, %v2059_v46  ;;  %v2073_v46 = vand.u32 4294901760, %v2072_v3 }
 0x1f4   : > { %v4898_v60 = vpack.c.bf16 %v2052_v21, %v2045_v26  ;;  %v2178_v14 = vand.u32 4294901760, %v2177_v38  ;;  %v5392_v26 = vand.u32 4294901760, %v4776_v17 }
 0x1f5   : > { %v2184_v2 = vsub.f32 %v4770_v8, %v5391_v51  ;;  %v2191_v6 = vsub.f32 %v4772_v33, %v5390_v16  ;;  %v5394_v16 = vand.u32 4294901760, %v4794_v24  ;;  %v5395_v51 = vand.u32 4294901760, %v4796_v52 }
 0x1f6   : > { %v4910_v21 = vpack.c.bf16 %v2178_v14, %v2171_v18  ;;  %v2079_v1 = vsub.f32 %v4776_v17, %v5392_v26  ;;  %v5397_v14 = vand.u32 4294901760, %v4800_v12  ;;  %v2086_v26 = vsub.f32 %v4798_v34, %v5396_v19 }
 0x1f7   : > { %v2185_v28 = vand.u32 4294901760, %v2184_v2  ;;  %v2192_v38 = vand.u32 4294901760, %v2191_v6  ;;  %v2198_v2 = vsub.f32 %v4794_v24, %v5394_v16  ;;  %v2205_v18 = vsub.f32 %v4796_v52, %v5395_v51 }
 0x1f8   : > { %v2080_v6 = vand.u32 4294901760, %v2079_v1  ;;  %v2093_v57 = vsub.f32 %v4800_v12, %v5397_v14  ;;  %v2087_v1 = vand.u32 4294901760, %v2086_v26 }
 0x1f9   : > { %v4924_v37 = vpack.c.bf16 %v2192_v38, %v2185_v28  ;;  %v2199_v38 = vand.u32 4294901760, %v2198_v2  ;;  %v2206_v3 = vand.u32 4294901760, %v2205_v18 }
 0x1fa   : > { %v4938_v28 = vpack.c.bf16 %v2080_v6, %v2073_v46  ;;  %v2094_v15 = vand.u32 4294901760, %v2093_v57 }
 0x1fb   : > { %v4940_v54 = vpack.c.bf16 %v2206_v3, %v2199_v38  ;;  %v890_v38 = vld [vmem:[%s5250_s4] sm:$0x3] }
 0x1fc   : > { %v4942_v16 = vpack.c.bf16 %v2094_v15, %v2087_v1  ;;  %v892_v15 = vlaneseq }
 0x1fe   : > { %v893_v18 = vshrl.u32 %v892_v15, 7 }
 0x200   : > { %v894_v57 = vsub.s32 0, %v893_v18  ;;  %v898_v3 = vsub.s32 1, %v893_v18 }
 0x202   : > { %v895_v26 = vrot.slane %v890_v38, %v894_v57  ;;  %v899_v46 = vrot.slane %v890_v38, %v898_v3 }
 0x2a8   : > { %v1794_v1 = vpop.f32.mrb[0].mxu1 }
 0x2a9   : > { %v3645_v23 = vadd.f32 %v1794_v1, %v895_v26  ;;  %v1796_v19 = vpop.f32.mrb[1].mxu1 }
 0x2aa   : > { %v3646_v14 = vadd.f32 %v1796_v19, %v899_v46 }
 0x2ab   : > { %vm1806_vm3 = vcmp.gt.f32.partialorder %v3645_v23, 0.0  ;;  %v1810_v51 = vmul.f32 0.2, %v3645_v23 }
 0x2ac   : > { %vm1807_vm4 = vcmp.gt.f32.partialorder %v3646_v14, 0.0  ;;  %v1811_v6 = vmul.f32 0.2, %v3646_v14  ;;  %v1801_v22 = vpop.f32.mrb[2].mxu1 }
 0x2ad   : > { %v1814_v2 = vsel %vm1806_vm3, %v3645_v23, %v1810_v51  ;;  %v3647_v40 = vadd.f32 %v1801_v22, %v895_v26  ;;  %v1803_v15 = vpop.f32.mrb[3].mxu1 }
 0x2ae   : > { %v4979_v50 = vand.u32 4294901760, %v1814_v2  ;;  %v1815_v34 = vsel %vm1807_vm4, %v3646_v14, %v1811_v6  ;;  %v3648_v12 = vadd.f32 %v1803_v15, %v899_v46 }
 0x2af   : > { %v4981_v24 = vand.u32 4294901760, %v1815_v34  ;;  %vm1808_vm5 = vcmp.gt.f32.partialorder %v3647_v40, 0.0  ;;  %v1812_v57 = vmul.f32 0.2, %v3647_v40 }
 0x2b0   : > { %v4984_v18 = vsub.f32 %v1814_v2, %v4979_v50  ;;  %vm1809_vm6 = vcmp.gt.f32.partialorder %v3648_v12, 0.0  ;;  %v1813_v19 = vmul.f32 0.2, %v3648_v12 }
 0x2b1   : > { %v4987_v38 = vsub.f32 %v1815_v34, %v4981_v24  ;;  %v1816_v3 = vsel %vm1808_vm5, %v3647_v40, %v1812_v57  ;;  %2761 = vmatprep.mubr.f32.mxu1 %v4981_v24 }
 0x2b2   : > { %v4990_v22 = vand.u32 4294901760, %v1816_v3  ;;  %v1817_v23 = vsel %vm1809_vm6, %v3648_v12, %v1813_v19  ;;  %2763 = vmatmul.mubr.f32.vlgmr.msra.gmra.mrb[4].mxu1 %v4979_v50  ;;  %v1961_v51 = vand.u32 4294901760, %v4984_v18 }
 0x2b3   : > { %v4994_v14 = vand.u32 4294901760, %v1817_v23  ;;  %v1955_v46 = vand.u32 4294901760, %v4987_v38 }
 0x2b4   : > { %v4998_v26 = vsub.f32 %v1816_v3, %v4990_v22  ;;  %v1962_v40 = vsub.f32 %v4984_v18, %v1961_v51 }
 0x2b5   : > { %v5004_v34 = vsub.f32 %v1817_v23, %v4994_v14  ;;  %2768 = vmatprep.mubr.f32.mxu1 %v4994_v14  ;;  %v1956_v12 = vsub.f32 %v4987_v38, %v1955_v46 }
 0x2b6   : > { %2770 = vmatmul.mubr.f32.gmra.mrb[6].mxu1 %v4990_v22  ;;  %v1976_v6 = vand.u32 4294901760, %v4998_v26  ;;  %v1963_v15 = vand.u32 4294901760, %v1962_v40  ;;  %v5580_v40 = vld [vmem:[#allocation13_spill] sm:$0xff] }
 0x2b7   : > { %v1957_v2 = vand.u32 4294901760, %v1956_v12  ;;  %v1970_v1 = vand.u32 4294901760, %v5004_v34  ;;  %v5581_v12 = vld [vmem:[#allocation12_spill] sm:$0xff] }
 0x2b8   : > { %v1977_v57 = vsub.f32 %v4998_v26, %v1976_v6 }
 0x2b9   : > { %1958 = vmatprep.mubr.f32.mxu0 %v1957_v2  ;;  %v1971_v19 = vsub.f32 %v5004_v34, %v1970_v1  ;;  %v5582_v2 = vpack.c.bf16 %v5580_v40, %v5581_v12 }
 0x2ba   : > { %1964 = vmatmul.mubr.f32.vlgmr.msra.gmra.mrb[2].mxu0 %v1963_v15  ;;  %v1978_v23 = vand.u32 4294901760, %v1977_v57  ;;  %v5583_v15 = vld [vmem:[#allocation21_spill] sm:$0xff] }
 0x2bb   : > { %3486 = vmatpush3.bf16.msra.mxu0 %v4806_v13  ;;  %v1972_v3 = vand.u32 4294901760, %v1971_v19  ;;  %v5568_v13 = vpack.c.bf16 %v5549_v32, %v5548_v7  ;;  %v5584_v57 = vld [vmem:[#allocation25_spill] sm:$0xff]  ;;  %v5585_v19 = vld [vmem:[#allocation27_spill] sm:$0xff] }
 0x2bc   : > { %3488 = vmatprep.subr.bf16.mxu0 %v4830_v35  ;;  %v5569_v35 = vpack.c.bf16 %v5551_v49, %v5550_v45 }
 0x2bd   : > { %1973 = vmatprep.mubr.f32.mxu0 %v1972_v3  ;;  %v5586_v3 = vld [vmem:[#allocation33_spill] sm:$0xff] }
 0x2be   : > { %1979 = vmatmul.mubr.f32.gmra.mrb[4].mxu0 %v1978_v23  ;;  %v5587_v23 = vld [vmem:[#allocation34_spill] sm:$0xff] }
 0x2bf   : > { %3490 = vmatpush3.bf16.msra.mxu0 %v4832_v44  ;;  %2209 = vmatprep.mubr.f32.mxu0 %v4981_v24  ;;  %v5570_v44 = vpack.c.bf16 %v5553_v29, %v5552_v27 }
 0x2c0   : > { %3492 = vmatprep.subr.bf16.mxu0 %v4844_v58  ;;  %v5571_v58 = vpack.c.bf16 %v5555_v25, %v5554_v63 }
 0x2c3   : > { %3494 = vmatpush3.bf16.msra.mxu0 %v4858_v43  ;;  %v5572_v43 = vpack.c.bf16 %v5557_v62, %v5556_v47 }
 0x2c4   : > { %3496 = vmatprep.subr.bf16.mxu0 %v4870_v31  ;;  %v5564_v31 = vpack.c.bf16 %v5538_v36, %v5537_v30 }
 0x2c7   : > { %3498 = vmatpush3.bf16.msra.mxu0 %v4872_v10  ;;  %v5565_v10 = vpack.c.bf16 %v5540_v39, %v5539_v41 }
 0x2c8   : > { %3500 = vmatprep.subr.bf16.mxu0 %v4884_v42  ;;  %v5573_v42 = vpack.c.bf16 %v5559_v9, %v5558_v0 }
 0x2cb   : > { %3502 = vmatpush3.bf16.msra.mxu0 %v4898_v60  ;;  %v5574_v60 = vpack.c.bf16 %v5561_v5, %v5560_v61 }
 0x2cc   : > { %3504 = vmatprep.subr.bf16.mxu0 %v4910_v21  ;;  %v5576_v21 = vpack.c.bf16 %v4772_v33, %v4770_v8 }
 0x2cf   : > { %3506 = vmatpush3.bf16.msra.mxu0 %v4912_v20  ;;  %v5566_v20 = vpack.c.bf16 %v5545_v59, %v5544_v53 }
 0x2d0   : > { %3508 = vmatprep.subr.bf16.mxu0 %v4924_v37  ;;  %v5577_v37 = vpack.c.bf16 %v4776_v17, %v4774_v48 }
 0x2d3   : > { %3510 = vmatpush3.bf16.msra.mxu0 %v4938_v28  ;;  %v5578_v28 = vld [vmem:[#allocation11_spill] sm:$0xff] }
 0x2d4   : > { %3512 = vmatprep.subr.bf16.mxu0 %v4940_v54  ;;  %v5567_v54 = vpack.c.bf16 %v5547_v11, %v5546_v56 }
 0x2d7   : > { %3514 = vmatpush3.bf16.msra.mxu0 %v4942_v16  ;;  %v5575_v16 = vpack.c.bf16 %v5563_v55, %v5562_v4 }
 0x2d8   : > { %3516 = vmatprep.subr.bf16.mxu0 %v5564_v31  ;;  %v5588_v31 = vld [vmem:[#allocation41_spill] sm:$0xff] }
 0x2da   : > { %2211 = vmatmul.mubr.f32.vlgmr.msra.gmra.mrb[6].mxu0 %v4979_v50 }
 0x2db   : > { %2216 = vmatprep.mubr.f32.mxu0 %v4994_v14  ;;  %3518 = vmatpush3.bf16.msra.mxu0 %v5565_v10  ;;  %v5589_v10 = vld [vmem:[#allocation44_spill] sm:$0xff] }
 0x2dc   : > { %3520 = vmatprep.subr.bf16.mxu0 %v5566_v20  ;;  %v5590_v20 = vld [vmem:[#allocation48_spill] sm:$0xff] }
 0x2de   : > { %2218 = vmatmul.mubr.f32.gmra.mrb[8].mxu0 %v4990_v22 }
 0x2df   : > { %3522 = vmatpush3.bf16.msra.mxu0 %v5567_v54  ;;  %2353 = vmatprep.mubr.f32.mxu0 %v4987_v38  ;;  %v5579_v38 = vpack.c.bf16 %v4796_v52, %v5578_v28  ;;  %v5591_v54 = vld [vmem:[#allocation51_spill] sm:$0xff] }
 0x2e0   : > { %3524 = vmatprep.subr.bf16.mxu0 %v5568_v13  ;;  %v5592_v13 = vld [vmem:[#allocation54_spill] sm:$0xff] }
 0x2e3   : > { %3526 = vmatpush3.bf16.msra.mxu0 %v5569_v35  ;;  %v5593_v35 = vld [vmem:[#allocation55_spill] sm:$0xff] }
 0x2e4   : > { %3528 = vmatprep.subr.bf16.mxu0 %v5570_v44  ;;  %v5594_v44 = vld [vmem:[#allocation56_spill] sm:$0xff] }
 0x2e7   : > { %3530 = vmatpush3.bf16.msra.mxu0 %v5571_v58  ;;  %v5595_v58 = vld [vmem:[#allocation5_spill] sm:$0xff] }
 0x2e8   : > { %3532 = vmatprep.subr.bf16.mxu0 %v5572_v43  ;;  %v5596_v43 = vld [vmem:[#allocation6_spill] sm:$0xff] }
 0x2eb   : > { %3534 = vmatpush3.bf16.msra.mxu0 %v5573_v42  ;;  %v5598_v42 = vand.u32 4294901760, %v5537_v30  ;;  %v5605_v30 = vand.u32 4294901760, %v5546_v56 }
 0x2ec   : > { %3536 = vmatprep.subr.bf16.mxu0 %v5574_v60  ;;  %v5599_v60 = vand.u32 4294901760, %v5538_v36  ;;  %v5606_v36 = vand.u32 4294901760, %v5547_v11  ;;  %v5611_v11 = vand.u32 4294901760, %v5552_v27  ;;  %v5618_v27 = vand.u32 4294901760, %v5559_v9 }
 0x2ed   : > { %v5625_v9 = vand.u32 4294901760, %v4774_v48 }
 0x2ef   : > { %3538 = vmatpush3.bf16.msra.mxu0 %v5575_v16  ;;  %v3579_v16 = vpack.c.bf16 %v5599_v60, %v5598_v42 }
 0x2f0   : > { %3540 = vmatprep.subr.bf16.mxu0 %v5576_v21  ;;  %v5600_v21 = vld [vmem:[#allocation10_spill] sm:$0xff] }
 0x2f3   : > { %3542 = vmatpush3.bf16.msra.mxu0 %v5577_v37  ;;  %v5601_v37 = vand.u32 4294901760, %v5539_v41  ;;  %v3585_v41 = vpack.c.bf16 %v5606_v36, %v5605_v30 }
 0x2f4   : > { %3544 = vmatprep.subr.bf16.mxu0 %v5579_v38  ;;  %v5602_v38 = vand.u32 4294901760, %v5540_v39  ;;  %v5607_v39 = vand.u32 4294901760, %v5548_v7 }
 0x2f7   : > { %3546 = vmatpush3.bf16.msra.mxu0 %v5582_v2  ;;  %v3581_v2 = vpack.c.bf16 %v5602_v38, %v5601_v37 }
 0x2f8   : > { %3548 = vmatprep.subr.bf16.mxu0 %v5583_v15  ;;  %v5603_v15 = vand.u32 4294901760, %v5544_v53  ;;  %v5608_v53 = vand.u32 4294901760, %v5549_v32  ;;  %v5613_v32 = vand.u32 4294901760, %v5554_v63  ;;  %v5620_v63 = vand.u32 4294901760, %v5561_v5 }
 0x2f9   : > { %v5627_v5 = vand.u32 4294901760, %v5578_v28 }
 0x2fa   : > { %2356 = vmatmul.mubr.f32.vlgmr.msra.gmra.mrb[10].mxu0 %v4984_v18  ;;  %v5610_v18 = vand.u32 4294901760, %v5551_v49  ;;  %v5617_v49 = vand.u32 4294901760, %v5558_v0  ;;  %v5624_v0 = vand.u32 4294901760, %v4772_v33 }
 0x2fb   : > { %2362 = vmatprep.mubr.f32.mxu0 %v5004_v34  ;;  %3550 = vmatpush3.bf16.msra.mxu0 %v5584_v57  ;;  %v5604_v57 = vand.u32 4294901760, %v5545_v59  ;;  %v5609_v59 = vand.u32 4294901760, %v5550_v45  ;;  %v5616_v45 = vand.u32 4294901760, %v5557_v62  ;;  %v5623_v62 = vand.u32 4294901760, %v4770_v8 }
 0x2fc   : > { %3552 = vmatprep.subr.bf16.mxu0 %v5585_v19  ;;  %v5630_v8 = vand.u32 4294901760, %v5580_v40 }
 0x2fd   : > { %v3583_v19 = vpack.c.bf16 %v5604_v57, %v5603_v15  ;;  %v3589_v56 = vpack.c.bf16 %v5610_v18, %v5609_v59 }
 0x2fe   : > { %2365 = vmatmul.mubr.f32.gmra.mrb[12].mxu0 %v4998_v26  ;;  %v5614_v26 = vand.u32 4294901760, %v5555_v25  ;;  %v5621_v25 = vand.u32 4294901760, %v5562_v4  ;;  %v5628_v4 = vand.u32 4294901760, %v4796_v52 }
 0x2ff   : > { %3554 = vmatpush3.bf16.msra.mxu0 %v5586_v3  ;;  %2469 = vmatprep.mubr.f32.mxu0 %v1955_v46  ;;  %v5597_v46 = vld [vmem:[#allocation9_spill] sm:$0xff]  ;;  %v3587_v3 = vpack.c.bf16 %v5608_v53, %v5607_v39 }
 0x300   : > { %3556 = vmatprep.subr.bf16.mxu0 %v5587_v23  ;;  %v3593_v34 = vpack.c.bf16 %v5614_v26, %v5613_v32 }
 0x303   : > { %3558 = vmatpush3.bf16.msra.mxu0 %v5588_v31 }
 0x304   : > { %3560 = vmatprep.subr.bf16.mxu0 %v5589_v10  ;;  %v3603_v10 = vpack.c.bf16 %v5624_v0, %v5623_v62 }
 0x307   : > { %3562 = vmatpush3.bf16.msra.mxu0 %v5590_v20 }
 0x308   : > { %3564 = vmatprep.subr.bf16.mxu0 %v5591_v54  ;;  %v3607_v54 = vpack.c.bf16 %v5628_v4, %v5627_v5 }
 0x30b   : > { %3566 = vmatpush3.bf16.msra.mxu0 %v5592_v13 }
 0x30c   : > { %3568 = vmatprep.subr.bf16.mxu0 %v5593_v35 }
 0x30f   : > { %3570 = vmatpush3.bf16.msra.mxu0 %v5594_v44 }
 0x310   : > { %3572 = vmatprep.subr.bf16.mxu0 %v5595_v58 }
 0x313   : > { %3574 = vmatpush3.bf16.msra.mxu0 %v5596_v43 }
 0x314   : > { %3576 = vmatprep.subr.bf16.mxu0 %v5597_v46 }
 0x317   : > { %3578 = vmatpush3.bf16.msra.mxu0 %v5600_v21 }
 0x318   : > { %3580 = vmatprep.subr.bf16.mxu0 %v3579_v16 }
 0x31a   : > { %2473 = vmatmul.mubr.f32.vlgmr.msra.gmra.mrb[14].mxu0 %v1961_v51  ;;  %v5612_v51 = vand.u32 4294901760, %v5553_v29  ;;  %v5619_v29 = vand.u32 4294901760, %v5560_v61  ;;  %v5626_v61 = vand.u32 4294901760, %v4776_v17 }
 0x31b   : > { %2480 = vmatprep.mubr.f32.mxu0 %v1970_v1  ;;  %3582 = vmatpush3.bf16.msra.mxu0 %v3581_v2  ;;  %v3597_v1 = vpack.c.bf16 %v5618_v27, %v5617_v49 }
 0x31c   : > { %3584 = vmatprep.subr.bf16.mxu0 %v3583_v19  ;;  %v3591_v7 = vpack.c.bf16 %v5612_v51, %v5611_v11  ;;  %v3599_v23 = vpack.c.bf16 %v5620_v63, %v5619_v29  ;;  %v3605_v20 = vpack.c.bf16 %v5626_v61, %v5625_v9 }
 0x31e   : > { %2484 = vmatmul.mubr.f32.gmra.mrb[16].mxu0 %v1976_v6 }
 0x31f   : > { %3586 = vmatpush3.bf16.msra.mxu0 %v3585_v41  ;;  %2650 = vmatprep.mubr.f32.mxu0 %v4981_v24  ;;  %v5615_v24 = vand.u32 4294901760, %v5556_v47  ;;  %v5622_v47 = vand.u32 4294901760, %v5563_v55  ;;  %v5629_v55 = vand.u32 4294901760, %v5581_v12 }
 0x320   : > { %3588 = vmatprep.subr.bf16.mxu0 %v3587_v3 }
 0x321   : > { %v3595_v6 = vpack.c.bf16 %v5616_v45, %v5615_v24  ;;  %v3601_v31 = vpack.c.bf16 %v5622_v47, %v5621_v25  ;;  %v3609_v13 = vpack.c.bf16 %v5630_v8, %v5629_v55 }
 0x323   : > { %3590 = vmatpush3.bf16.msra.mxu0 %v3589_v56 }
 0x324   : > { %3592 = vmatprep.subr.bf16.mxu0 %v3591_v7 }
 0x327   : > { %3594 = vmatpush3.bf16.msra.mxu0 %v3593_v34 }
 0x328   : > { %3596 = vmatprep.subr.bf16.mxu0 %v3595_v6 }
 0x32b   : > { %3598 = vmatpush3.bf16.msra.mxu0 %v3597_v1 }
 0x32c   : > { %3600 = vmatprep.subr.bf16.mxu0 %v3599_v23 }
 0x32f   : > { %3602 = vmatpush3.bf16.msra.mxu0 %v3601_v31 }
 0x330   : > { %3604 = vmatprep.subr.bf16.mxu0 %v3603_v10 }
 0x333   : > { %3606 = vmatpush3.bf16.msra.mxu0 %v3605_v20 }
 0x334   : > { %3608 = vmatprep.subr.bf16.mxu0 %v3607_v54 }
 0x337   : > { %3610 = vmatpush3.bf16.msra.mxu0 %v3609_v13 }
 0x33a   : > { %2652 = vmatmul.mubr.f32.vlgmr.msra.gmra.mrb[18].mxu0 %v4979_v50  ;;  %v2870_v50 = vld [vmem:[%s5252_s6] ss:$0 sm:$0xff] }
 0x33b   : > { %2657 = vmatprep.mubr.f32.mxu0 %v4994_v14 }
 0x33e   : > { %2659 = vmatmul.mubr.f32.gmra.mrb[20].mxu0 %v4990_v22 }
 0x385   : > { %v3139_v33 = vpop.f32.mrb[4].mxu1 }
 0x386   : > { %v3140_v48 = vpop.f32.mrb[5].mxu1 }
 0x387   : > { %v3141_v17 = vadd.f32 %v3140_v48, %v3139_v33 }
 0x389   : > { %v3142_v52 = vpop.f32.mrb[6].mxu1 }
 0x38a   : > { %v3143_v28 = vpop.f32.mrb[7].mxu1 }
 0x38b   : > { %v3144_v35 = vadd.f32 %v3143_v28, %v3142_v52 }
 0x38d   : > { %v2949_v44 = vpop.f32.mrb[2].mxu0 }
 0x38e   : > { %v2950_v12 = vpop.f32.mrb[3].mxu0 }
 0x38f   : > { %v2951_v58 = vadd.f32 %v2950_v12, %v2949_v44 }
 0x391   : > { %v2952_v40 = vpop.f32.mrb[4].mxu0  ;;  %v1966_v22 = vadd.f32 %v2951_v58, %v2870_v50 }
 0x392   : > { %v2953_v43 = vpop.f32.mrb[5].mxu0 }
 0x393   : > { %v2954_v46 = vadd.f32 %v2953_v43, %v2952_v40 }
 0x395   : > { %v1981_v38 = vadd.f32 %v2954_v46, %v2870_v50 }
 0x3ad   : > { %v2987_v14 = vpop.f32.mrb[6].mxu0 }
 0x3ae   : > { %v2988_v42 = vpop.f32.mrb[7].mxu0 }
 0x3af   : > { %v2989_v60 = vadd.f32 %v2988_v42, %v2987_v14 }
 0x3b1   : > { %v2213_v16 = vadd.f32 %v2989_v60, %v1966_v22  ;;  %v2990_v21 = vpop.f32.mrb[8].mxu0 }
 0x3b2   : > { %v2991_v37 = vpop.f32.mrb[9].mxu0 }
 0x3b3   : > { %v2992_v2 = vadd.f32 %v2991_v37, %v2990_v21 }
 0x3b5   : > { %v2220_v15 = vadd.f32 %v2992_v2, %v1981_v38 }
 0x3cd   : > { %v3025_v57 = vpop.f32.mrb[10].mxu0 }
 0x3ce   : > { %v3026_v19 = vpop.f32.mrb[11].mxu0 }
 0x3cf   : > { %v3027_v30 = vadd.f32 %v3026_v19, %v3025_v57 }
 0x3d1   : > { %v2358_v36 = vadd.f32 %v3027_v30, %v2213_v16  ;;  %v3028_v41 = vpop.f32.mrb[12].mxu0 }
 0x3d2   : > { %v3029_v39 = vpop.f32.mrb[13].mxu0 }
 0x3d3   : > { %v3030_v53 = vadd.f32 %v3029_v39, %v3028_v41 }
 0x3d5   : > { %v2367_v3 = vadd.f32 %v3030_v53, %v2220_v15 }
 0x3ed   : > { %v3063_v59 = vpop.f32.mrb[14].mxu0 }
 0x3ee   : > { %v3064_v18 = vpop.f32.mrb[15].mxu0 }
 0x3ef   : > { %v3065_v56 = vadd.f32 %v3064_v18, %v3063_v59 }
 0x3f1   : > { %v2475_v11 = vadd.f32 %v3065_v56, %v2358_v36  ;;  %v3066_v51 = vpop.f32.mrb[16].mxu0 }
 0x3f2   : > { %v3067_v7 = vpop.f32.mrb[17].mxu0 }
 0x3f3   : > { %v3068_v32 = vadd.f32 %v3067_v7, %v3066_v51 }
 0x3f5   : > { %v2486_v26 = vadd.f32 %v3068_v32, %v2367_v3 }
 0x40d   : > { %v3101_v34 = vpop.f32.mrb[18].mxu0 }
 0x40e   : > { %v3102_v24 = vpop.f32.mrb[19].mxu0 }
 0x40f   : > { %v3103_v45 = vadd.f32 %v3102_v24, %v3101_v34 }
 0x411   : > { %v2654_v6 = vadd.f32 %v3103_v45, %v2475_v11  ;;  %v3104_v49 = vpop.f32.mrb[20].mxu0 }
 0x412   : > { %v3105_v27 = vpop.f32.mrb[21].mxu0 }
 0x413   : > { %v2765_v1 = vadd.f32 %v3141_v17, %v2654_v6  ;;  %v3106_v29 = vadd.f32 %v3105_v27, %v3104_v49 }
 0x415   : > { %3720 = vtanh.f32 %v2765_v1  ;;  %v2661_v63 = vadd.f32 %v3106_v29, %v2486_v26 }
 0x417   : > { %v2772_v23 = vadd.f32 %v3144_v35, %v2661_v63 }
 0x419   : > { %3722 = vtanh.f32 %v2772_v23 }
 0x41e   : > { %2787 = sbr.rel (!%p3870_p5) target bundleno = 1089 (0x441), region = 52 }
 0x41f   : > { %v3721_v25 = vpop.eup %3720 }
 0x420   : > { %2778 = vst.msk [vmem:[%s284_s20] sm:$0xff] %vm2777_vm7, %v3721_v25 }
 0x423   : > { %v3723_v47 = vpop.eup %3722 }
 0x424   : > { %2779 = vst.msk [vmem:[%s284_s20 + $0x8] sm:$0xff] %vm2777_vm7, %v3723_v47 }
 0x425   : > { %s5636_s22 = smov (!%p2790_p11, %s2789_s22), 2 }
 0x426   : > { %s5191_s23 = sshll.u32 %s5636_s22, 7 }
 0x427   : > { %s2794_s29 = ssub.s32 256, %s5191_s23 }
 0x428   : > { %2795 = vsyncadd %s5186_s21, %s2794_s29  ;;  %p2874_p12 = scmp.ne.s32.totalorder %s5191_s23, 0  ;;  %s2880_s8 = sshll.u32 %s3853_s28, 8 }
 0x429   : > { %s5200_s11 = scalar_lea.hbm %s5253_s7, %s2880_s8  ;;  %s2800_s14 = sshll.u32 %s284_s20, 4  ;;  %s5202_s14 = int_to_ptr.vmem [resolvable:$true] %s2800_s14 }
 0x42a   : > { %s3724_s19 = scalar_lea.vmem %s5202_s14, %s5191_s23  ;;  %s3789_s15 = smov [#allocation2]  }
 0x42b   : > { %p3725_p13 = scmp.ne.s32.totalorder %s5202_s14, %s3724_s19  ;;  %s3728_s16 = sshll.u32 %s3789_s15, 4  ;;  %s3729_s16 = int_to_ptr.vmem [resolvable:$false] %s3728_s16 }
 0x42c   : > { %s3730_s28 = scalar_lea.vmem %s3729_s16, 512  ;;  %p3731_p2 = scmp.lt.s32.totalorder %s5202_s14, %s3729_s16 }
 0x42d   : > { %p3726_p0 = pnand %p3725_p13, %p2874_p12  ;;  %p3732_p3 = scmp.lt.s32.totalorder %s3730_s28, %s3724_s19 }
 0x42f   : > { %p3727_p1 = pneg %p3726_p0  ;;  %p3733_p4 = por %p3732_p3, %p3731_p2 }
 0x431   : > { %p3734_p5 = pnand %p3733_p4, %p3727_p1 }
 0x433   : > { %3737 = shalt.err (!%p3734_p5)
}
 0x434   : > { %s3738_s17 = scalar_lea.hbm %s5200_s11, %s5191_s23  ;;  %s3742_s22 = scalar_lea.hbm %s5253_s7, 384 }
 0x435   : > { %p3739_p7 = scmp.ne.s32.totalorder %s5200_s11, %s3738_s17  ;;  %p3743_p10 = scmp.lt.u32.totalorder %s5200_s11, %s5253_s7 }
 0x436   : > { %p3744_p11 = scmp.lt.u32.totalorder %s3742_s22, %s3738_s17  ;;  %p3746_p0 = scmp.lt.u32.totalorder %s3738_s17, %s5200_s11 }
 0x437   : > { %p3740_p8 = pnand %p3739_p7, %p2874_p12 }
 0x438   : > { %p3745_p13 = por %p3744_p11, %p3743_p10 }
 0x439   : > { %p3741_p9 = pneg %p3740_p8 }
 0x43a   : > { %p3747_p1 = por %p3746_p0, %p3745_p13 }
 0x43c   : > { %p3748_p2 = pnand %p3747_p1, %p3741_p9 }
 0x43e   : > { %3751 = shalt.err (!%p3748_p2)
}
 0x43f   : > { %s3790_s9 = smov 128   ;;  %s3791_s13 = smov 8  }
 0x440   : > { %2806 = dma.vmem_to_hbm [thread:$0]  (%p2874_p12), %s5202_s14, %s5191_s23, %s5200_s11, %s5186_s21, %s3790_s9, %s3790_s9, %s3791_s13  }
 0x441 PF: > { %p3684_p3 = scmp.ge.s32.totalorder %s3786_s27, 2  ;;  %s2815_s19 = sand.u32 1, %s3774_s24  }
 0x442   : > { %s2816_s15 = scalar_lea.sflag [#allocation3], %s2815_s19 }
 0x443   : > { %p3681_p4 = pnand %p3684_p3, %p3874_p6 }
 0x445   : > { %3769 = dma.done.wait (!%p3681_p4), %s2816_s15, 256  }
 0x446   : > { %3771 = vsyncadd (!%p3681_p4), %s2816_s15, 4294967040  ;;  %p17_p5 = scmp.ge.s32.totalorder %s3857_s30, 4   ;;  %s5631_s24 = smov %s3778_s25 }
 0x447   : > { %s5632_s25 = smov %s3782_s26  ;;  %s5633_s26 = smov %s3868_s10 }
 0x448   : > { %s5634_s27 = smov %s3857_s30  ;;  %19 = sbr.rel (!%p17_p5) target bundleno = 3 (0x3), region = 83 }
 0x44f   :  { %2821 = vsyncpa [#allocation3], 1 }
 0x450   :  { %2823 = vsyncpa [#allocation3 + $0x1], 1 }

</bundles_post_ra>
